<compile_context>
chip_gen: v7x
topology: tpu7x:2x2x1
jax: 0.10.0
libtpu: 0.0.40
codegen_flags: <defaults>
</compile_context>

<pallas_src>
import jax
import jax.numpy as jnp
from jax.experimental import pallas as pl
from jax.experimental.pallas import tpu as pltpu

# ---- small, BERT-shaped synthetic config -----------------------------------
B, S, H = 2, 8, 32            # batch, seq len, hidden size
NUM_HEADS, HEAD_DIM = 2, 16   # H == NUM_HEADS * HEAD_DIM
INTERMEDIATE = 64             # FFN inner dim
NUM_LAYERS = 2
VOCAB = 100
NUM_HAZARDS = 10              # SemEval food-hazard: 10 hazard categories
NUM_PRODUCTS = 22             # 22 product categories
HEAD_PAD = 128                # lane-padded width of the fused classifier output
LN_EPS = 1e-12                # BERT LayerNorm eps
BS = B * S                    # flattened row axis (fills one bf16 sublane tile)


# ---- in-kernel helpers (f32 elementwise math) -------------------------------
def _layernorm(x, gamma, beta):
    mean = jnp.mean(x, axis=-1, keepdims=True)
    var = jnp.mean((x - mean) ** 2, axis=-1, keepdims=True)
    return (x - mean) * jax.lax.rsqrt(var + LN_EPS) * gamma + beta


def _gelu(x):
    # TODO(synk): HF BertModel default hidden_act='gelu' is the exact erf GELU;
    # tanh approximation (gelu_new) is used here to avoid erf lowering.
    c = 0.7978845608028654  # sqrt(2/pi)
    return 0.5 * x * (1.0 + jnp.tanh(c * (x + 0.044715 * x * x * x)))


# ---- fused whole-model kernel ------------------------------------------------
def bert_fused_kernel(
        # whole-batch inputs (batch folded into the block)
        we_ref,                    # (B, S, H) gathered word embeddings (f32)
        pe_ref, te_ref,            # (S, H), (1, H) position / token-type-0 emb
        embg_ref, embb_ref,        # (1, H) embedding LayerNorm gamma / beta
        bias_ref,                  # (B, 1, S) additive attention-mask bias
        # per-layer weights, stacked over NUM_LAYERS, indexed by layer grid axis
        wq_ref, bq_ref, wk_ref, bk_ref, wv_ref, bv_ref,
        wo_ref, bo_ref, ln1g_ref, ln1b_ref,
        w1_ref, b1_ref, w2_ref, b2_ref, ln2g_ref, ln2b_ref,
        # fused, lane-padded classifier heads
        wh_ref, bh_ref,            # (H, 128) bf16, (1, 128) f32
        # output
        out_ref,                   # (B, 128) padded logits (lane-dense)
        # scratch (persists across the layer grid axis)
        x_sc):                     # (B, S, H) f32 resident activation
    l = pl.program_id(0)

    # --- embeddings: computed in registers, selected only at l == 0 ----------
    # (cheap VPU work off the critical path; avoids a serialized VMEM
    #  store->load at the start of the first layer step)
    emb = we_ref[...] + pe_ref[...] + te_ref[...]
    emb_ln = _layernorm(emb, embg_ref[...], embb_ref[...])
    x3 = jnp.where(l == 0, emb_ln, x_sc[...])         # (B, S, H) f32
    x = x3.reshape(BS, H)                              # flat row axis
    x_bf = x.astype(jnp.bfloat16)                      # (16, 32) bf16

    # --- self-attention -------------------------------------------------------
    q = jnp.dot(x_bf, wq_ref[0], preferred_element_type=jnp.float32) + bq_ref[0]
    k = jnp.dot(x_bf, wk_ref[0], preferred_element_type=jnp.float32) + bk_ref[0]
    v = jnp.dot(x_bf, wv_ref[0], preferred_element_type=jnp.float32) + bv_ref[0]

    bias3 = bias_ref[...]                              # (B, 1, S)
    scale = 1.0 / (HEAD_DIM ** 0.5)
    ctx_heads = []
    for h in range(NUM_HEADS):                         # static head loop
        lo = h * HEAD_DIM
        qh = q[:, lo:lo + HEAD_DIM].reshape(B, S, HEAD_DIM).astype(jnp.bfloat16)
        kh = k[:, lo:lo + HEAD_DIM].reshape(B, S, HEAD_DIM).astype(jnp.bfloat16)
        vh = v[:, lo:lo + HEAD_DIM].reshape(B, S, HEAD_DIM).astype(jnp.bfloat16)
        s = jnp.einsum('bqd,bkd->bqk', qh, kh,
                       preferred_element_type=jnp.float32) * scale + bias3
        s = s - jnp.max(s, axis=-1, keepdims=True)     # f32 softmax
        p = jnp.exp(s)
        p = p / jnp.sum(p, axis=-1, keepdims=True)     # exact: rows sum to 1
        ctx_heads.append(jnp.einsum('bqk,bkd->bqd', p.astype(jnp.bfloat16), vh,
                                    preferred_element_type=jnp.float32))

    # per-head contexts assembled in registers (no scratch round-trip), then a
    # single full-width output projection
    ctx = jnp.concatenate(ctx_heads, axis=-1).reshape(BS, H).astype(jnp.bfloat16)
    attn = jnp.dot(ctx, wo_ref[0], preferred_element_type=jnp.float32) + bo_ref[0]

    x1 = _layernorm(x + attn, ln1g_ref[0], ln1b_ref[0])

    # --- feed-forward ---------------------------------------------------------
    hmid = _gelu(jnp.dot(x1.astype(jnp.bfloat16), w1_ref[0],
                         preferred_element_type=jnp.float32) + b1_ref[0])
    ffn = jnp.dot(hmid.astype(jnp.bfloat16), w2_ref[0],
                  preferred_element_type=jnp.float32) + b2_ref[0]
    x_new = _layernorm(x1 + ffn, ln2g_ref[0], ln2b_ref[0])    # (BS, H)
    x_new3 = x_new.reshape(B, S, H)
    x_sc[...] = x_new3                          # carry activation to next layer

    # --- last layer: CLS pooling + fused dual classifier heads ----------------
    @pl.when(l == NUM_LAYERS - 1)
    def _():
        pooled = x_new3[:, 0, :]                # (B, H) CLS; dropout = identity
        logits = jnp.dot(pooled.astype(jnp.bfloat16), wh_ref[...],
                         preferred_element_type=jnp.float32) + bh_ref[...]
        out_ref[...] = logits                   # (B, 128) lane-dense store


# ---- BlockSpec plumbing ------------------------------------------------------
_LAYER_STACK_DIMS = [
    (H, H), (1, H),                       # Wq, bq
    (H, H), (1, H),                       # Wk, bk
    (H, H), (1, H),                       # Wv, bv
    (H, H), (1, H),                       # Wo, bo
    (1, H), (1, H),                       # LN1 gamma, beta
    (H, INTERMEDIATE), (1, INTERMEDIATE),  # W1, b1
    (INTERMEDIATE, H), (1, H),            # W2, b2
    (1, H), (1, H),                       # LN2 gamma, beta
]


def _build_in_specs():
    specs = [
        pl.BlockSpec((B, S, H), lambda l: (0, 0, 0)),    # gathered word emb
        pl.BlockSpec((S, H),    lambda l: (0, 0)),       # position emb
        pl.BlockSpec((1, H),    lambda l: (0, 0)),       # token-type-0 emb
        pl.BlockSpec((1, H),    lambda l: (0, 0)),       # emb LN gamma
        pl.BlockSpec((1, H),    lambda l: (0, 0)),       # emb LN beta
        pl.BlockSpec((B, 1, S), lambda l: (0, 0, 0)),    # attn-mask bias
    ]
    specs += [pl.BlockSpec((1, d1, d2), lambda l: (l, 0, 0))
              for (d1, d2) in _LAYER_STACK_DIMS]         # stacked layer params
    specs += [
        pl.BlockSpec((H, HEAD_PAD), lambda l: (0, 0)),   # fused head weight
        pl.BlockSpec((1, HEAD_PAD), lambda l: (0, 0)),   # fused head bias
    ]
    return specs


# ---- full forward (one pallas_call) -----------------------------------------
@jax.jit
def bert_dual_heads_forward(params, input_ids, attention_mask):
    # Embedding gather is glue (data-dependent lookup); everything else is Pallas.
    we_g = params['word_emb'][input_ids]                              # (B, S, H)
    mask_bias = ((1.0 - attention_mask.astype(jnp.float32)) * -1e9)   # (B, S)
    mask_bias = mask_bias.reshape(B, 1, S)

    grid_spec = pltpu.PrefetchScalarGridSpec(
        num_scalar_prefetch=0,
        grid=(NUM_LAYERS,),                       # layer axis only
        in_specs=_build_in_specs(),
        out_specs=pl.BlockSpec((B, HEAD_PAD), lambda l: (0, 0)),
        scratch_shapes=[pltpu.VMEM((B, S, H), jnp.float32)],  # resident activation
    )
    logits_pad = pl.pallas_call(
        bert_fused_kernel,
        out_shape=jax.ShapeDtypeStruct((B, HEAD_PAD), jnp.float32),
        grid_spec=grid_spec,
        compiler_params=pltpu.CompilerParams(
            dimension_semantics=("arbitrary",)),
    )(we_g, params['pos_emb'], params['type_emb'],
      params['emb_ln_g'], params['emb_ln_b'], mask_bias,
      *params['layer_stack'],
      params['heads_w'], params['heads_b'])

    return {'hazard_logits': logits_pad[:, :NUM_HAZARDS],
            'product_logits': logits_pad[:, NUM_HAZARDS:NUM_HAZARDS + NUM_PRODUCTS]}


# ---- deterministic parameter construction -----------------------------------
def init_params(key):
    keys = iter(jax.random.split(key, 256))

    def dense(shape, dtype, scale=0.02):
        return (scale * jax.random.normal(next(keys), shape,
                                          dtype=jnp.float32)).astype(dtype)

    def stacked(shape, dtype):
        return jnp.stack([dense(shape, dtype) for _ in range(NUM_LAYERS)])

    # fused, lane-padded dual classifier: cols [0:10] hazard, [10:32] product
    w_heads = jnp.zeros((H, HEAD_PAD), jnp.float32)
    w_heads = w_heads.at[:, :NUM_HAZARDS].set(dense((H, NUM_HAZARDS), jnp.float32))
    w_heads = w_heads.at[:, NUM_HAZARDS:NUM_HAZARDS + NUM_PRODUCTS].set(
        dense((H, NUM_PRODUCTS), jnp.float32))

    zeros = lambda *shape: jnp.zeros(shape, jnp.float32)
    ones = lambda *shape: jnp.ones(shape, jnp.float32)

    return {
        'word_emb': dense((VOCAB, H), jnp.float32),
        'pos_emb': dense((S, H), jnp.float32),
        # single token-type row (type 0); token_type_ids assumed all-zero.
        'type_emb': dense((1, H), jnp.float32),
        'emb_ln_g': ones(1, H),
        'emb_ln_b': zeros(1, H),
        # per-layer params stacked over a leading NUM_LAYERS axis; matmul
        # weights are stored bf16 (MXU inputs), biases/LN params stay f32.
        'layer_stack': [
            stacked((H, H), jnp.bfloat16), zeros(NUM_LAYERS, 1, H),   # Wq, bq
            stacked((H, H), jnp.bfloat16), zeros(NUM_LAYERS, 1, H),   # Wk, bk
            stacked((H, H), jnp.bfloat16), zeros(NUM_LAYERS, 1, H),   # Wv, bv
            stacked((H, H), jnp.bfloat16), zeros(NUM_LAYERS, 1, H),   # Wo, bo
            ones(NUM_LAYERS, 1, H), zeros(NUM_LAYERS, 1, H),          # LN1
            stacked((H, INTERMEDIATE), jnp.bfloat16),
            zeros(NUM_LAYERS, 1, INTERMEDIATE),                       # W1, b1
            stacked((INTERMEDIATE, H), jnp.bfloat16),
            zeros(NUM_LAYERS, 1, H),                                  # W2, b2
            ones(NUM_LAYERS, 1, H), zeros(NUM_LAYERS, 1, H),          # LN2
        ],
        'heads_w': w_heads.astype(jnp.bfloat16),
        'heads_b': zeros(1, HEAD_PAD),
    }


if __name__ == "__main__":
    key = jax.random.PRNGKey(0)
    k_param, k_ids = jax.random.split(key)

    params = init_params(k_param)
    input_ids = jax.random.randint(k_ids, (B, S), 0, VOCAB, dtype=jnp.int32)
    attention_mask = jnp.ones((B, S), dtype=jnp.int32)

    out = bert_dual_heads_forward(params, input_ids, attention_mask)
    jax.block_until_ready(out)

    assert out['hazard_logits'].shape == (B, NUM_HAZARDS)
    assert out['product_logits'].shape == (B, NUM_PRODUCTS)
    assert jnp.all(jnp.isfinite(out['hazard_logits']))
    assert jnp.all(jnp.isfinite(out['product_logits']))
    print("KERNEL_OK")
</pallas_src>

<mosaic_0001>
module attributes {stable_mosaic.version = 11 : i64} {
  func.func @bert_fused_kernel(%arg0: i32, %arg1: memref<2x8x32xf32, #tpu.memory_space<vmem>>, %arg2: memref<8x32xf32, #tpu.memory_space<vmem>>, %arg3: memref<1x32xf32, #tpu.memory_space<vmem>>, %arg4: memref<1x32xf32, #tpu.memory_space<vmem>>, %arg5: memref<1x32xf32, #tpu.memory_space<vmem>>, %arg6: memref<2x1x8xf32, #tpu.memory_space<vmem>>, %arg7: memref<1x32x32xbf16, #tpu.memory_space<vmem>>, %arg8: memref<1x1x32xf32, #tpu.memory_space<vmem>>, %arg9: memref<1x32x32xbf16, #tpu.memory_space<vmem>>, %arg10: memref<1x1x32xf32, #tpu.memory_space<vmem>>, %arg11: memref<1x32x32xbf16, #tpu.memory_space<vmem>>, %arg12: memref<1x1x32xf32, #tpu.memory_space<vmem>>, %arg13: memref<1x32x32xbf16, #tpu.memory_space<vmem>>, %arg14: memref<1x1x32xf32, #tpu.memory_space<vmem>>, %arg15: memref<1x1x32xf32, #tpu.memory_space<vmem>>, %arg16: memref<1x1x32xf32, #tpu.memory_space<vmem>>, %arg17: memref<1x32x64xbf16, #tpu.memory_space<vmem>>, %arg18: memref<1x1x64xf32, #tpu.memory_space<vmem>>, %arg19: memref<1x64x32xbf16, #tpu.memory_space<vmem>>, %arg20: memref<1x1x32xf32, #tpu.memory_space<vmem>>, %arg21: memref<1x1x32xf32, #tpu.memory_space<vmem>>, %arg22: memref<1x1x32xf32, #tpu.memory_space<vmem>>, %arg23: memref<32x128xbf16, #tpu.memory_space<vmem>>, %arg24: memref<1x128xf32, #tpu.memory_space<vmem>>, %arg25: memref<2x128xf32, #tpu.memory_space<vmem>>, %arg26: memref<2x8x32xf32, #tpu.memory_space<vmem>>) attributes {dimension_semantics = [#tpu.dimension_semantics<arbitrary>], iteration_bounds = array<i64: 2>, scalar_prefetch = 0 : i64, scratch_operands = 1 : i64, tpu.core_type = #tpu.core_type<tc>, window_params = [{pipeline_mode = #tpu.pipeline_mode<synchronous>, transform_indices = @transform_0, window_bounds = array<i64: 2, 8, 32>}, {pipeline_mode = #tpu.pipeline_mode<synchronous>, transform_indices = @transform_1, window_bounds = array<i64: 8, 32>}, {pipeline_mode = #tpu.pipeline_mode<synchronous>, transform_indices = @transform_2, window_bounds = array<i64: 1, 32>}, {pipeline_mode = #tpu.pipeline_mode<synchronous>, transform_indices = @transform_3, window_bounds = array<i64: 1, 32>}, {pipeline_mode = #tpu.pipeline_mode<synchronous>, transform_indices = @transform_4, window_bounds = array<i64: 1, 32>}, {pipeline_mode = #tpu.pipeline_mode<synchronous>, transform_indices = @transform_5, window_bounds = array<i64: 2, 1, 8>}, {transform_indices = @transform_6, window_bounds = array<i64: 1, 32, 32>}, {transform_indices = @transform_7, window_bounds = array<i64: 1, 1, 32>}, {transform_indices = @transform_8, window_bounds = array<i64: 1, 32, 32>}, {transform_indices = @transform_9, window_bounds = array<i64: 1, 1, 32>}, {transform_indices = @transform_10, window_bounds = array<i64: 1, 32, 32>}, {transform_indices = @transform_11, window_bounds = array<i64: 1, 1, 32>}, {transform_indices = @transform_12, window_bounds = array<i64: 1, 32, 32>}, {transform_indices = @transform_13, window_bounds = array<i64: 1, 1, 32>}, {transform_indices = @transform_14, window_bounds = array<i64: 1, 1, 32>}, {transform_indices = @transform_15, window_bounds = array<i64: 1, 1, 32>}, {transform_indices = @transform_16, window_bounds = array<i64: 1, 32, 64>}, {transform_indices = @transform_17, window_bounds = array<i64: 1, 1, 64>}, {transform_indices = @transform_18, window_bounds = array<i64: 1, 64, 32>}, {transform_indices = @transform_19, window_bounds = array<i64: 1, 1, 32>}, {transform_indices = @transform_20, window_bounds = array<i64: 1, 1, 32>}, {transform_indices = @transform_21, window_bounds = array<i64: 1, 1, 32>}, {pipeline_mode = #tpu.pipeline_mode<synchronous>, transform_indices = @transform_22, window_bounds = array<i64: 32, 128>}, {pipeline_mode = #tpu.pipeline_mode<synchronous>, transform_indices = @transform_23, window_bounds = array<i64: 1, 128>}, {pipeline_mode = #tpu.pipeline_mode<synchronous>, transform_indices = @transform_24, window_bounds = array<i64: 2, 128>}]} {
    %c0 = arith.constant 0 : index
    %c0_0 = arith.constant 0 : index
    %c0_1 = arith.constant 0 : index
    %0 = vector.load %arg1[%c0, %c0_0, %c0_1] : memref<2x8x32xf32, #tpu.memory_space<vmem>>, vector<2x8x32xf32>
    %c0_2 = arith.constant 0 : index
    %c0_3 = arith.constant 0 : index
    %1 = vector.load %arg2[%c0_2, %c0_3] : memref<8x32xf32, #tpu.memory_space<vmem>>, vector<8x32xf32>
    %2 = vector.shape_cast %1 : vector<8x32xf32> to vector<1x8x32xf32>
    %3 = vector.broadcast %2 : vector<1x8x32xf32> to vector<2x8x32xf32>
    %4 = arith.addf %0, %3 : vector<2x8x32xf32>
    %c0_4 = arith.constant 0 : index
    %c0_5 = arith.constant 0 : index
    %5 = vector.load %arg3[%c0_4, %c0_5] : memref<1x32xf32, #tpu.memory_space<vmem>>, vector<1x32xf32>
    %6 = vector.shape_cast %5 : vector<1x32xf32> to vector<1x1x32xf32>
    %7 = vector.broadcast %6 : vector<1x1x32xf32> to vector<2x8x32xf32>
    %8 = arith.addf %4, %7 : vector<2x8x32xf32>
    %c0_6 = arith.constant 0 : index
    %c0_7 = arith.constant 0 : index
    %9 = vector.load %arg4[%c0_6, %c0_7] : memref<1x32xf32, #tpu.memory_space<vmem>>, vector<1x32xf32>
    %c0_8 = arith.constant 0 : index
    %c0_9 = arith.constant 0 : index
    %10 = vector.load %arg5[%c0_8, %c0_9] : memref<1x32xf32, #tpu.memory_space<vmem>>, vector<1x32xf32>
    %cst = arith.constant dense<0.000000e+00> : vector<2x8xf32>
    %11 = vector.multi_reduction <add>, %8, %cst [2] : vector<2x8x32xf32> to vector<2x8xf32>
    %12 = vector.shape_cast %11 : vector<2x8xf32> to vector<2x8x1xf32>
    %cst_10 = arith.constant 3.200000e+01 : f32
    %13 = vector.broadcast %cst_10 : f32 to vector<2x8x1xf32>
    %14 = arith.divf %12, %13 : vector<2x8x1xf32>
    %15 = vector.broadcast %14 : vector<2x8x1xf32> to vector<2x8x32xf32>
    %16 = arith.subf %8, %15 : vector<2x8x32xf32>
    %17 = arith.mulf %16, %16 : vector<2x8x32xf32>
    %cst_11 = arith.constant dense<0.000000e+00> : vector<2x8xf32>
    %18 = vector.multi_reduction <add>, %17, %cst_11 [2] : vector<2x8x32xf32> to vector<2x8xf32>
    %19 = vector.shape_cast %18 : vector<2x8xf32> to vector<2x8x1xf32>
    %cst_12 = arith.constant 3.200000e+01 : f32
    %20 = vector.broadcast %cst_12 : f32 to vector<2x8x1xf32>
    %21 = arith.divf %19, %20 : vector<2x8x1xf32>
    %22 = vector.broadcast %14 : vector<2x8x1xf32> to vector<2x8x32xf32>
    %23 = arith.subf %8, %22 : vector<2x8x32xf32>
    %cst_13 = arith.constant 9.99999996E-13 : f32
    %24 = vector.broadcast %cst_13 : f32 to vector<2x8x1xf32>
    %25 = arith.addf %21, %24 : vector<2x8x1xf32>
    %26 = math.rsqrt %25 : vector<2x8x1xf32>
    %27 = vector.broadcast %26 : vector<2x8x1xf32> to vector<2x8x32xf32>
    %28 = arith.mulf %23, %27 : vector<2x8x32xf32>
    %29 = vector.shape_cast %9 : vector<1x32xf32> to vector<1x1x32xf32>
    %30 = vector.broadcast %29 : vector<1x1x32xf32> to vector<2x8x32xf32>
    %31 = arith.mulf %28, %30 : vector<2x8x32xf32>
    %32 = vector.shape_cast %10 : vector<1x32xf32> to vector<1x1x32xf32>
    %33 = vector.broadcast %32 : vector<1x1x32xf32> to vector<2x8x32xf32>
    %34 = arith.addf %31, %33 : vector<2x8x32xf32>
    %c0_i32 = arith.constant 0 : i32
    %35 = arith.cmpi eq, %arg0, %c0_i32 : i32
    %c0_14 = arith.constant 0 : index
    %c0_15 = arith.constant 0 : index
    %c0_16 = arith.constant 0 : index
    %36 = vector.load %arg26[%c0_14, %c0_15, %c0_16] : memref<2x8x32xf32, #tpu.memory_space<vmem>>, vector<2x8x32xf32>
    %37 = arith.select %35, %34, %36 : vector<2x8x32xf32>
    %38 = vector.shape_cast %37 : vector<2x8x32xf32> to vector<16x32xf32>
    %39 = arith.truncf %38 : vector<16x32xf32> to vector<16x32xbf16>
    %c0_17 = arith.constant 0 : index
    %c0_18 = arith.constant 0 : index
    %c0_19 = arith.constant 0 : index
    %40 = vector.load %arg7[%c0_17, %c0_18, %c0_19] : memref<1x32x32xbf16, #tpu.memory_space<vmem>>, vector<1x32x32xbf16>
    %41 = vector.shape_cast %40 : vector<1x32x32xbf16> to vector<32x32xbf16>
    %cst_20 = arith.constant dense<0.000000e+00> : vector<16x32xf32>
    %42 = tpu.matmul %39, %41, %cst_20 {dimension_numbers = #tpu.dot_dimension_numbers<[1], [0], [0], [1], [0, 0, 1, 1], [], []>} : vector<16x32xbf16>, vector<32x32xbf16>, vector<16x32xf32> -> vector<16x32xf32>
    %c0_21 = arith.constant 0 : index
    %c0_22 = arith.constant 0 : index
    %c0_23 = arith.constant 0 : index
    %43 = vector.load %arg8[%c0_21, %c0_22, %c0_23] : memref<1x1x32xf32, #tpu.memory_space<vmem>>, vector<1x1x32xf32>
    %44 = vector.shape_cast %43 : vector<1x1x32xf32> to vector<1x32xf32>
    %45 = vector.broadcast %44 : vector<1x32xf32> to vector<16x32xf32>
    %46 = arith.addf %42, %45 : vector<16x32xf32>
    %c0_24 = arith.constant 0 : index
    %c0_25 = arith.constant 0 : index
    %c0_26 = arith.constant 0 : index
    %47 = vector.load %arg9[%c0_24, %c0_25, %c0_26] : memref<1x32x32xbf16, #tpu.memory_space<vmem>>, vector<1x32x32xbf16>
    %48 = vector.shape_cast %47 : vector<1x32x32xbf16> to vector<32x32xbf16>
    %cst_27 = arith.constant dense<0.000000e+00> : vector<16x32xf32>
    %49 = tpu.matmul %39, %48, %cst_27 {dimension_numbers = #tpu.dot_dimension_numbers<[1], [0], [0], [1], [0, 0, 1, 1], [], []>} : vector<16x32xbf16>, vector<32x32xbf16>, vector<16x32xf32> -> vector<16x32xf32>
    %c0_28 = arith.constant 0 : index
    %c0_29 = arith.constant 0 : index
    %c0_30 = arith.constant 0 : index
    %50 = vector.load %arg10[%c0_28, %c0_29, %c0_30] : memref<1x1x32xf32, #tpu.memory_space<vmem>>, vector<1x1x32xf32>
    %51 = vector.shape_cast %50 : vector<1x1x32xf32> to vector<1x32xf32>
    %52 = vector.broadcast %51 : vector<1x32xf32> to vector<16x32xf32>
    %53 = arith.addf %49, %52 : vector<16x32xf32>
    %c0_31 = arith.constant 0 : index
    %c0_32 = arith.constant 0 : index
    %c0_33 = arith.constant 0 : index
    %54 = vector.load %arg11[%c0_31, %c0_32, %c0_33] : memref<1x32x32xbf16, #tpu.memory_space<vmem>>, vector<1x32x32xbf16>
    %55 = vector.shape_cast %54 : vector<1x32x32xbf16> to vector<32x32xbf16>
    %cst_34 = arith.constant dense<0.000000e+00> : vector<16x32xf32>
    %56 = tpu.matmul %39, %55, %cst_34 {dimension_numbers = #tpu.dot_dimension_numbers<[1], [0], [0], [1], [0, 0, 1, 1], [], []>} : vector<16x32xbf16>, vector<32x32xbf16>, vector<16x32xf32> -> vector<16x32xf32>
    %c0_35 = arith.constant 0 : index
    %c0_36 = arith.constant 0 : index
    %c0_37 = arith.constant 0 : index
    %57 = vector.load %arg12[%c0_35, %c0_36, %c0_37] : memref<1x1x32xf32, #tpu.memory_space<vmem>>, vector<1x1x32xf32>
    %58 = vector.shape_cast %57 : vector<1x1x32xf32> to vector<1x32xf32>
    %59 = vector.broadcast %58 : vector<1x32xf32> to vector<16x32xf32>
    %60 = arith.addf %56, %59 : vector<16x32xf32>
    %c0_38 = arith.constant 0 : index
    %c0_39 = arith.constant 0 : index
    %c0_40 = arith.constant 0 : index
    %61 = vector.load %arg6[%c0_38, %c0_39, %c0_40] : memref<2x1x8xf32, #tpu.memory_space<vmem>>, vector<2x1x8xf32>
    %62 = vector.extract_strided_slice %46 {offsets = [0, 0], sizes = [16, 16], strides = [1, 1]} : vector<16x32xf32> to vector<16x16xf32>
    %63 = vector.shape_cast %62 : vector<16x16xf32> to vector<2x8x16xf32>
    %64 = arith.truncf %63 : vector<2x8x16xf32> to vector<2x8x16xbf16>
    %65 = vector.extract_strided_slice %53 {offsets = [0, 0], sizes = [16, 16], strides = [1, 1]} : vector<16x32xf32> to vector<16x16xf32>
    %66 = vector.shape_cast %65 : vector<16x16xf32> to vector<2x8x16xf32>
    %67 = arith.truncf %66 : vector<2x8x16xf32> to vector<2x8x16xbf16>
    %68 = vector.extract_strided_slice %60 {offsets = [0, 0], sizes = [16, 16], strides = [1, 1]} : vector<16x32xf32> to vector<16x16xf32>
    %69 = vector.shape_cast %68 : vector<16x16xf32> to vector<2x8x16xf32>
    %70 = arith.truncf %69 : vector<2x8x16xf32> to vector<2x8x16xbf16>
    "tpu.trace_start"() <{level = 10 : i32, message = "bqd,bkd->bqk"}> : () -> ()
    %cst_41 = arith.constant dense<0.000000e+00> : vector<2x8x8xf32>
    %71 = tpu.matmul %64, %67, %cst_41 {dimension_numbers = #tpu.dot_dimension_numbers<[2], [2], [1], [1], [0, 0, 0, 1, 1, 1], [0], [0]>} : vector<2x8x16xbf16>, vector<2x8x16xbf16>, vector<2x8x8xf32> -> vector<2x8x8xf32>
    "tpu.trace_stop"() : () -> ()
    %cst_42 = arith.constant 2.500000e-01 : f32
    %72 = vector.broadcast %cst_42 : f32 to vector<2x8x8xf32>
    %73 = arith.mulf %71, %72 : vector<2x8x8xf32>
    %74 = vector.broadcast %61 : vector<2x1x8xf32> to vector<2x8x8xf32>
    %75 = arith.addf %73, %74 : vector<2x8x8xf32>
    %cst_43 = arith.constant dense<0xFF800000> : vector<2x8xf32>
    %76 = vector.multi_reduction <maximumf>, %75, %cst_43 [2] : vector<2x8x8xf32> to vector<2x8xf32>
    %77 = vector.shape_cast %76 : vector<2x8xf32> to vector<2x8x1xf32>
    %78 = vector.broadcast %77 : vector<2x8x1xf32> to vector<2x8x8xf32>
    %79 = arith.subf %75, %78 : vector<2x8x8xf32>
    %80 = math.exp %79 : vector<2x8x8xf32>
    %cst_44 = arith.constant dense<0.000000e+00> : vector<2x8xf32>
    %81 = vector.multi_reduction <add>, %80, %cst_44 [2] : vector<2x8x8xf32> to vector<2x8xf32>
    %82 = vector.shape_cast %81 : vector<2x8xf32> to vector<2x8x1xf32>
    %83 = vector.broadcast %82 : vector<2x8x1xf32> to vector<2x8x8xf32>
    %84 = arith.divf %80, %83 : vector<2x8x8xf32>
    %85 = arith.truncf %84 : vector<2x8x8xf32> to vector<2x8x8xbf16>
    "tpu.trace_start"() <{level = 10 : i32, message = "bqk,bkd->bqd"}> : () -> ()
    %cst_45 = arith.constant dense<0.000000e+00> : vector<2x8x16xf32>
    %86 = tpu.matmul %85, %70, %cst_45 {dimension_numbers = #tpu.dot_dimension_numbers<[2], [1], [1], [2], [0, 0, 0, 1, 1, 2], [0], [0]>} : vector<2x8x8xbf16>, vector<2x8x16xbf16>, vector<2x8x16xf32> -> vector<2x8x16xf32>
    "tpu.trace_stop"() : () -> ()
    %87 = vector.extract_strided_slice %46 {offsets = [0, 16], sizes = [16, 16], strides = [1, 1]} : vector<16x32xf32> to vector<16x16xf32>
    %88 = vector.shape_cast %87 : vector<16x16xf32> to vector<2x8x16xf32>
    %89 = arith.truncf %88 : vector<2x8x16xf32> to vector<2x8x16xbf16>
    %90 = vector.extract_strided_slice %53 {offsets = [0, 16], sizes = [16, 16], strides = [1, 1]} : vector<16x32xf32> to vector<16x16xf32>
    %91 = vector.shape_cast %90 : vector<16x16xf32> to vector<2x8x16xf32>
    %92 = arith.truncf %91 : vector<2x8x16xf32> to vector<2x8x16xbf16>
    %93 = vector.extract_strided_slice %60 {offsets = [0, 16], sizes = [16, 16], strides = [1, 1]} : vector<16x32xf32> to vector<16x16xf32>
    %94 = vector.shape_cast %93 : vector<16x16xf32> to vector<2x8x16xf32>
    %95 = arith.truncf %94 : vector<2x8x16xf32> to vector<2x8x16xbf16>
    "tpu.trace_start"() <{level = 10 : i32, message = "bqd,bkd->bqk"}> : () -> ()
    %cst_46 = arith.constant dense<0.000000e+00> : vector<2x8x8xf32>
    %96 = tpu.matmul %89, %92, %cst_46 {dimension_numbers = #tpu.dot_dimension_numbers<[2], [2], [1], [1], [0, 0, 0, 1, 1, 1], [0], [0]>} : vector<2x8x16xbf16>, vector<2x8x16xbf16>, vector<2x8x8xf32> -> vector<2x8x8xf32>
    "tpu.trace_stop"() : () -> ()
    %cst_47 = arith.constant 2.500000e-01 : f32
    %97 = vector.broadcast %cst_47 : f32 to vector<2x8x8xf32>
    %98 = arith.mulf %96, %97 : vector<2x8x8xf32>
    %99 = vector.broadcast %61 : vector<2x1x8xf32> to vector<2x8x8xf32>
    %100 = arith.addf %98, %99 : vector<2x8x8xf32>
    %cst_48 = arith.constant dense<0xFF800000> : vector<2x8xf32>
    %101 = vector.multi_reduction <maximumf>, %100, %cst_48 [2] : vector<2x8x8xf32> to vector<2x8xf32>
    %102 = vector.shape_cast %101 : vector<2x8xf32> to vector<2x8x1xf32>
    %103 = vector.broadcast %102 : vector<2x8x1xf32> to vector<2x8x8xf32>
    %104 = arith.subf %100, %103 : vector<2x8x8xf32>
    %105 = math.exp %104 : vector<2x8x8xf32>
    %cst_49 = arith.constant dense<0.000000e+00> : vector<2x8xf32>
    %106 = vector.multi_reduction <add>, %105, %cst_49 [2] : vector<2x8x8xf32> to vector<2x8xf32>
    %107 = vector.shape_cast %106 : vector<2x8xf32> to vector<2x8x1xf32>
    %108 = vector.broadcast %107 : vector<2x8x1xf32> to vector<2x8x8xf32>
    %109 = arith.divf %105, %108 : vector<2x8x8xf32>
    %110 = arith.truncf %109 : vector<2x8x8xf32> to vector<2x8x8xbf16>
    "tpu.trace_start"() <{level = 10 : i32, message = "bqk,bkd->bqd"}> : () -> ()
    %cst_50 = arith.constant dense<0.000000e+00> : vector<2x8x16xf32>
    %111 = tpu.matmul %110, %95, %cst_50 {dimension_numbers = #tpu.dot_dimension_numbers<[2], [1], [1], [2], [0, 0, 0, 1, 1, 2], [0], [0]>} : vector<2x8x8xbf16>, vector<2x8x16xbf16>, vector<2x8x16xf32> -> vector<2x8x16xf32>
    "tpu.trace_stop"() : () -> ()
    %112 = tpu.concatenate %86, %111 in 2 : vector<2x8x16xf32>, vector<2x8x16xf32> -> vector<2x8x32xf32>
    %113 = vector.shape_cast %112 : vector<2x8x32xf32> to vector<16x32xf32>
    %114 = arith.truncf %113 : vector<16x32xf32> to vector<16x32xbf16>
    %c0_51 = arith.constant 0 : index
    %c0_52 = arith.constant 0 : index
    %c0_53 = arith.constant 0 : index
    %115 = vector.load %arg13[%c0_51, %c0_52, %c0_53] : memref<1x32x32xbf16, #tpu.memory_space<vmem>>, vector<1x32x32xbf16>
    %116 = vector.shape_cast %115 : vector<1x32x32xbf16> to vector<32x32xbf16>
    %cst_54 = arith.constant dense<0.000000e+00> : vector<16x32xf32>
    %117 = tpu.matmul %114, %116, %cst_54 {dimension_numbers = #tpu.dot_dimension_numbers<[1], [0], [0], [1], [0, 0, 1, 1], [], []>} : vector<16x32xbf16>, vector<32x32xbf16>, vector<16x32xf32> -> vector<16x32xf32>
    %c0_55 = arith.constant 0 : index
    %c0_56 = arith.constant 0 : index
    %c0_57 = arith.constant 0 : index
    %118 = vector.load %arg14[%c0_55, %c0_56, %c0_57] : memref<1x1x32xf32, #tpu.memory_space<vmem>>, vector<1x1x32xf32>
    %119 = vector.shape_cast %118 : vector<1x1x32xf32> to vector<1x32xf32>
    %120 = vector.broadcast %119 : vector<1x32xf32> to vector<16x32xf32>
    %121 = arith.addf %117, %120 : vector<16x32xf32>
    %122 = arith.addf %38, %121 : vector<16x32xf32>
    %c0_58 = arith.constant 0 : index
    %c0_59 = arith.constant 0 : index
    %c0_60 = arith.constant 0 : index
    %123 = vector.load %arg15[%c0_58, %c0_59, %c0_60] : memref<1x1x32xf32, #tpu.memory_space<vmem>>, vector<1x1x32xf32>
    %124 = vector.shape_cast %123 : vector<1x1x32xf32> to vector<1x32xf32>
    %c0_61 = arith.constant 0 : index
    %c0_62 = arith.constant 0 : index
    %c0_63 = arith.constant 0 : index
    %125 = vector.load %arg16[%c0_61, %c0_62, %c0_63] : memref<1x1x32xf32, #tpu.memory_space<vmem>>, vector<1x1x32xf32>
    %126 = vector.shape_cast %125 : vector<1x1x32xf32> to vector<1x32xf32>
    %cst_64 = arith.constant dense<0.000000e+00> : vector<16xf32>
    %127 = vector.multi_reduction <add>, %122, %cst_64 [1] : vector<16x32xf32> to vector<16xf32>
    %128 = vector.shape_cast %127 : vector<16xf32> to vector<16x1xf32>
    %cst_65 = arith.constant 3.200000e+01 : f32
    %129 = vector.broadcast %cst_65 : f32 to vector<16x1xf32>
    %130 = arith.divf %128, %129 : vector<16x1xf32>
    %131 = vector.broadcast %130 : vector<16x1xf32> to vector<16x32xf32>
    %132 = arith.subf %122, %131 : vector<16x32xf32>
    %133 = arith.mulf %132, %132 : vector<16x32xf32>
    %cst_66 = arith.constant dense<0.000000e+00> : vector<16xf32>
    %134 = vector.multi_reduction <add>, %133, %cst_66 [1] : vector<16x32xf32> to vector<16xf32>
    %135 = vector.shape_cast %134 : vector<16xf32> to vector<16x1xf32>
    %cst_67 = arith.constant 3.200000e+01 : f32
    %136 = vector.broadcast %cst_67 : f32 to vector<16x1xf32>
    %137 = arith.divf %135, %136 : vector<16x1xf32>
    %138 = vector.broadcast %130 : vector<16x1xf32> to vector<16x32xf32>
    %139 = arith.subf %122, %138 : vector<16x32xf32>
    %cst_68 = arith.constant 9.99999996E-13 : f32
    %140 = vector.broadcast %cst_68 : f32 to vector<16x1xf32>
    %141 = arith.addf %137, %140 : vector<16x1xf32>
    %142 = math.rsqrt %141 : vector<16x1xf32>
    %143 = vector.broadcast %142 : vector<16x1xf32> to vector<16x32xf32>
    %144 = arith.mulf %139, %143 : vector<16x32xf32>
    %145 = vector.broadcast %124 : vector<1x32xf32> to vector<16x32xf32>
    %146 = arith.mulf %144, %145 : vector<16x32xf32>
    %147 = vector.broadcast %126 : vector<1x32xf32> to vector<16x32xf32>
    %148 = arith.addf %146, %147 : vector<16x32xf32>
    %149 = arith.truncf %148 : vector<16x32xf32> to vector<16x32xbf16>
    %c0_69 = arith.constant 0 : index
    %c0_70 = arith.constant 0 : index
    %c0_71 = arith.constant 0 : index
    %150 = vector.load %arg17[%c0_69, %c0_70, %c0_71] : memref<1x32x64xbf16, #tpu.memory_space<vmem>>, vector<1x32x64xbf16>
    %151 = vector.shape_cast %150 : vector<1x32x64xbf16> to vector<32x64xbf16>
    %cst_72 = arith.constant dense<0.000000e+00> : vector<16x64xf32>
    %152 = tpu.matmul %149, %151, %cst_72 {dimension_numbers = #tpu.dot_dimension_numbers<[1], [0], [0], [1], [0, 0, 1, 1], [], []>} : vector<16x32xbf16>, vector<32x64xbf16>, vector<16x64xf32> -> vector<16x64xf32>
    %c0_73 = arith.constant 0 : index
    %c0_74 = arith.constant 0 : index
    %c0_75 = arith.constant 0 : index
    %153 = vector.load %arg18[%c0_73, %c0_74, %c0_75] : memref<1x1x64xf32, #tpu.memory_space<vmem>>, vector<1x1x64xf32>
    %154 = vector.shape_cast %153 : vector<1x1x64xf32> to vector<1x64xf32>
    %155 = vector.broadcast %154 : vector<1x64xf32> to vector<16x64xf32>
    %156 = arith.addf %152, %155 : vector<16x64xf32>
    %cst_76 = arith.constant 5.000000e-01 : f32
    %157 = vector.broadcast %cst_76 : f32 to vector<16x64xf32>
    %158 = arith.mulf %157, %156 : vector<16x64xf32>
    %cst_77 = arith.constant 4.471500e-02 : f32
    %159 = vector.broadcast %cst_77 : f32 to vector<16x64xf32>
    %160 = arith.mulf %159, %156 : vector<16x64xf32>
    %161 = arith.mulf %160, %156 : vector<16x64xf32>
    %162 = arith.mulf %161, %156 : vector<16x64xf32>
    %163 = arith.addf %156, %162 : vector<16x64xf32>
    %cst_78 = arith.constant 0.797884583 : f32
    %164 = vector.broadcast %cst_78 : f32 to vector<16x64xf32>
    %165 = arith.mulf %164, %163 : vector<16x64xf32>
    %166 = math.tanh %165 : vector<16x64xf32>
    %cst_79 = arith.constant 1.000000e+00 : f32
    %167 = vector.broadcast %cst_79 : f32 to vector<16x64xf32>
    %168 = arith.addf %167, %166 : vector<16x64xf32>
    %169 = arith.mulf %158, %168 : vector<16x64xf32>
    %170 = arith.truncf %169 : vector<16x64xf32> to vector<16x64xbf16>
    %c0_80 = arith.constant 0 : index
    %c0_81 = arith.constant 0 : index
    %c0_82 = arith.constant 0 : index
    %171 = vector.load %arg19[%c0_80, %c0_81, %c0_82] : memref<1x64x32xbf16, #tpu.memory_space<vmem>>, vector<1x64x32xbf16>
    %172 = vector.shape_cast %171 : vector<1x64x32xbf16> to vector<64x32xbf16>
    %cst_83 = arith.constant dense<0.000000e+00> : vector<16x32xf32>
    %173 = tpu.matmul %170, %172, %cst_83 {dimension_numbers = #tpu.dot_dimension_numbers<[1], [0], [0], [1], [0, 0, 1, 1], [], []>} : vector<16x64xbf16>, vector<64x32xbf16>, vector<16x32xf32> -> vector<16x32xf32>
    %c0_84 = arith.constant 0 : index
    %c0_85 = arith.constant 0 : index
    %c0_86 = arith.constant 0 : index
    %174 = vector.load %arg20[%c0_84, %c0_85, %c0_86] : memref<1x1x32xf32, #tpu.memory_space<vmem>>, vector<1x1x32xf32>
    %175 = vector.shape_cast %174 : vector<1x1x32xf32> to vector<1x32xf32>
    %176 = vector.broadcast %175 : vector<1x32xf32> to vector<16x32xf32>
    %177 = arith.addf %173, %176 : vector<16x32xf32>
    %178 = arith.addf %148, %177 : vector<16x32xf32>
    %c0_87 = arith.constant 0 : index
    %c0_88 = arith.constant 0 : index
    %c0_89 = arith.constant 0 : index
    %179 = vector.load %arg21[%c0_87, %c0_88, %c0_89] : memref<1x1x32xf32, #tpu.memory_space<vmem>>, vector<1x1x32xf32>
    %180 = vector.shape_cast %179 : vector<1x1x32xf32> to vector<1x32xf32>
    %c0_90 = arith.constant 0 : index
    %c0_91 = arith.constant 0 : index
    %c0_92 = arith.constant 0 : index
    %181 = vector.load %arg22[%c0_90, %c0_91, %c0_92] : memref<1x1x32xf32, #tpu.memory_space<vmem>>, vector<1x1x32xf32>
    %182 = vector.shape_cast %181 : vector<1x1x32xf32> to vector<1x32xf32>
    %cst_93 = arith.constant dense<0.000000e+00> : vector<16xf32>
    %183 = vector.multi_reduction <add>, %178, %cst_93 [1] : vector<16x32xf32> to vector<16xf32>
    %184 = vector.shape_cast %183 : vector<16xf32> to vector<16x1xf32>
    %cst_94 = arith.constant 3.200000e+01 : f32
    %185 = vector.broadcast %cst_94 : f32 to vector<16x1xf32>
    %186 = arith.divf %184, %185 : vector<16x1xf32>
    %187 = vector.broadcast %186 : vector<16x1xf32> to vector<16x32xf32>
    %188 = arith.subf %178, %187 : vector<16x32xf32>
    %189 = arith.mulf %188, %188 : vector<16x32xf32>
    %cst_95 = arith.constant dense<0.000000e+00> : vector<16xf32>
    %190 = vector.multi_reduction <add>, %189, %cst_95 [1] : vector<16x32xf32> to vector<16xf32>
    %191 = vector.shape_cast %190 : vector<16xf32> to vector<16x1xf32>
    %cst_96 = arith.constant 3.200000e+01 : f32
    %192 = vector.broadcast %cst_96 : f32 to vector<16x1xf32>
    %193 = arith.divf %191, %192 : vector<16x1xf32>
    %194 = vector.broadcast %186 : vector<16x1xf32> to vector<16x32xf32>
    %195 = arith.subf %178, %194 : vector<16x32xf32>
    %cst_97 = arith.constant 9.99999996E-13 : f32
    %196 = vector.broadcast %cst_97 : f32 to vector<16x1xf32>
    %197 = arith.addf %193, %196 : vector<16x1xf32>
    %198 = math.rsqrt %197 : vector<16x1xf32>
    %199 = vector.broadcast %198 : vector<16x1xf32> to vector<16x32xf32>
    %200 = arith.mulf %195, %199 : vector<16x32xf32>
    %201 = vector.broadcast %180 : vector<1x32xf32> to vector<16x32xf32>
    %202 = arith.mulf %200, %201 : vector<16x32xf32>
    %203 = vector.broadcast %182 : vector<1x32xf32> to vector<16x32xf32>
    %204 = arith.addf %202, %203 : vector<16x32xf32>
    %205 = vector.shape_cast %204 : vector<16x32xf32> to vector<2x8x32xf32>
    %c0_98 = arith.constant 0 : index
    %c0_99 = arith.constant 0 : index
    %c0_100 = arith.constant 0 : index
    %206 = vector.load %arg26[%c0_98, %c0_99, %c0_100] : memref<2x8x32xf32, #tpu.memory_space<vmem>>, vector<2x8x32xf32>
    tpu.vector_store %arg26[%c0_98, %c0_99, %c0_100], %205 {strides = array<i32>} : memref<2x8x32xf32, #tpu.memory_space<vmem>>, vector<2x8x32xf32>,
    %c1_i32 = arith.constant 1 : i32
    %207 = arith.cmpi eq, %arg0, %c1_i32 : i32
    %208 = arith.extui %207 : i1 to i32
    %c0_i32_101 = arith.constant 0 : i32
    %209 = arith.cmpi ne, %208, %c0_i32_101 : i32
    scf.if %209 {
      %210 = vector.extract_strided_slice %205 {offsets = [0, 0, 0], sizes = [2, 1, 32], strides = [1, 1, 1]} : vector<2x8x32xf32> to vector<2x1x32xf32>
      %211 = vector.shape_cast %210 : vector<2x1x32xf32> to vector<2x32xf32>
      %212 = arith.truncf %211 : vector<2x32xf32> to vector<2x32xbf16>
      %c0_102 = arith.constant 0 : index
      %c0_103 = arith.constant 0 : index
      %213 = vector.load %arg23[%c0_102, %c0_103] : memref<32x128xbf16, #tpu.memory_space<vmem>>, vector<32x128xbf16>
      %cst_104 = arith.constant dense<0.000000e+00> : vector<2x128xf32>
      %214 = tpu.matmul %212, %213, %cst_104 {dimension_numbers = #tpu.dot_dimension_numbers<[1], [0], [0], [1], [0, 0, 1, 1], [], []>} : vector<2x32xbf16>, vector<32x128xbf16>, vector<2x128xf32> -> vector<2x128xf32>
      %c0_105 = arith.constant 0 : index
      %c0_106 = arith.constant 0 : index
      %215 = vector.load %arg24[%c0_105, %c0_106] : memref<1x128xf32, #tpu.memory_space<vmem>>, vector<1x128xf32>
      %216 = vector.broadcast %215 : vector<1x128xf32> to vector<2x128xf32>
      %217 = arith.addf %214, %216 : vector<2x128xf32>
      %c0_107 = arith.constant 0 : index
      %c0_108 = arith.constant 0 : index
      %218 = vector.load %arg25[%c0_107, %c0_108] : memref<2x128xf32, #tpu.memory_space<vmem>>, vector<2x128xf32>
      tpu.vector_store %arg25[%c0_107, %c0_108], %217 {strides = array<i32>} : memref<2x128xf32, #tpu.memory_space<vmem>>, vector<2x128xf32>,
    } else {
    }
    return
  }
  func.func @transform_0(%arg0: i32) -> (i32, i32, i32) {
    %c0_i32 = arith.constant 0 : i32
    %c0_i32_0 = arith.constant 0 : i32
    %c0_i32_1 = arith.constant 0 : i32
    %c0_i32_2 = arith.constant 0 : i32
    return %c0_i32, %c0_i32_0, %c0_i32_1 : i32, i32, i32
  }
  func.func @transform_1(%arg0: i32) -> (i32, i32) {
    %c0_i32 = arith.constant 0 : i32
    %c0_i32_0 = arith.constant 0 : i32
    %c0_i32_1 = arith.constant 0 : i32
    return %c0_i32, %c0_i32_0 : i32, i32
  }
  func.func @transform_2(%arg0: i32) -> (i32, i32) {
    %c0_i32 = arith.constant 0 : i32
    %c0_i32_0 = arith.constant 0 : i32
    %c0_i32_1 = arith.constant 0 : i32
    return %c0_i32, %c0_i32_0 : i32, i32
  }
  func.func @transform_3(%arg0: i32) -> (i32, i32) {
    %c0_i32 = arith.constant 0 : i32
    %c0_i32_0 = arith.constant 0 : i32
    %c0_i32_1 = arith.constant 0 : i32
    return %c0_i32, %c0_i32_0 : i32, i32
  }
  func.func @transform_4(%arg0: i32) -> (i32, i32) {
    %c0_i32 = arith.constant 0 : i32
    %c0_i32_0 = arith.constant 0 : i32
    %c0_i32_1 = arith.constant 0 : i32
    return %c0_i32, %c0_i32_0 : i32, i32
  }
  func.func @transform_5(%arg0: i32) -> (i32, i32, i32) {
    %c0_i32 = arith.constant 0 : i32
    %c0_i32_0 = arith.constant 0 : i32
    %c0_i32_1 = arith.constant 0 : i32
    %c0_i32_2 = arith.constant 0 : i32
    return %c0_i32, %c0_i32_0, %c0_i32_1 : i32, i32, i32
  }
  func.func @transform_6(%arg0: i32) -> (i32, i32, i32) {
    %c0_i32 = arith.constant 0 : i32
    %c0_i32_0 = arith.constant 0 : i32
    %c0_i32_1 = arith.constant 0 : i32
    return %arg0, %c0_i32, %c0_i32_0 : i32, i32, i32
  }
  func.func @transform_7(%arg0: i32) -> (i32, i32, i32) {
    %c0_i32 = arith.constant 0 : i32
    %c0_i32_0 = arith.constant 0 : i32
    %c0_i32_1 = arith.constant 0 : i32
    return %arg0, %c0_i32, %c0_i32_0 : i32, i32, i32
  }
  func.func @transform_8(%arg0: i32) -> (i32, i32, i32) {
    %c0_i32 = arith.constant 0 : i32
    %c0_i32_0 = arith.constant 0 : i32
    %c0_i32_1 = arith.constant 0 : i32
    return %arg0, %c0_i32, %c0_i32_0 : i32, i32, i32
  }
  func.func @transform_9(%arg0: i32) -> (i32, i32, i32) {
    %c0_i32 = arith.constant 0 : i32
    %c0_i32_0 = arith.constant 0 : i32
    %c0_i32_1 = arith.constant 0 : i32
    return %arg0, %c0_i32, %c0_i32_0 : i32, i32, i32
  }
  func.func @transform_10(%arg0: i32) -> (i32, i32, i32) {
    %c0_i32 = arith.constant 0 : i32
    %c0_i32_0 = arith.constant 0 : i32
    %c0_i32_1 = arith.constant 0 : i32
    return %arg0, %c0_i32, %c0_i32_0 : i32, i32, i32
  }
  func.func @transform_11(%arg0: i32) -> (i32, i32, i32) {
    %c0_i32 = arith.constant 0 : i32
    %c0_i32_0 = arith.constant 0 : i32
    %c0_i32_1 = arith.constant 0 : i32
    return %arg0, %c0_i32, %c0_i32_0 : i32, i32, i32
  }
  func.func @transform_12(%arg0: i32) -> (i32, i32, i32) {
    %c0_i32 = arith.constant 0 : i32
    %c0_i32_0 = arith.constant 0 : i32
    %c0_i32_1 = arith.constant 0 : i32
    return %arg0, %c0_i32, %c0_i32_0 : i32, i32, i32
  }
  func.func @transform_13(%arg0: i32) -> (i32, i32, i32) {
    %c0_i32 = arith.constant 0 : i32
    %c0_i32_0 = arith.constant 0 : i32
    %c0_i32_1 = arith.constant 0 : i32
    return %arg0, %c0_i32, %c0_i32_0 : i32, i32, i32
  }
  func.func @transform_14(%arg0: i32) -> (i32, i32, i32) {
    %c0_i32 = arith.constant 0 : i32
    %c0_i32_0 = arith.constant 0 : i32
    %c0_i32_1 = arith.constant 0 : i32
    return %arg0, %c0_i32, %c0_i32_0 : i32, i32, i32
  }
  func.func @transform_15(%arg0: i32) -> (i32, i32, i32) {
    %c0_i32 = arith.constant 0 : i32
    %c0_i32_0 = arith.constant 0 : i32
    %c0_i32_1 = arith.constant 0 : i32
    return %arg0, %c0_i32, %c0_i32_0 : i32, i32, i32
  }
  func.func @transform_16(%arg0: i32) -> (i32, i32, i32) {
    %c0_i32 = arith.constant 0 : i32
    %c0_i32_0 = arith.constant 0 : i32
    %c0_i32_1 = arith.constant 0 : i32
    return %arg0, %c0_i32, %c0_i32_0 : i32, i32, i32
  }
  func.func @transform_17(%arg0: i32) -> (i32, i32, i32) {
    %c0_i32 = arith.constant 0 : i32
    %c0_i32_0 = arith.constant 0 : i32
    %c0_i32_1 = arith.constant 0 : i32
    return %arg0, %c0_i32, %c0_i32_0 : i32, i32, i32
  }
  func.func @transform_18(%arg0: i32) -> (i32, i32, i32) {
    %c0_i32 = arith.constant 0 : i32
    %c0_i32_0 = arith.constant 0 : i32
    %c0_i32_1 = arith.constant 0 : i32
    return %arg0, %c0_i32, %c0_i32_0 : i32, i32, i32
  }
  func.func @transform_19(%arg0: i32) -> (i32, i32, i32) {
    %c0_i32 = arith.constant 0 : i32
    %c0_i32_0 = arith.constant 0 : i32
    %c0_i32_1 = arith.constant 0 : i32
    return %arg0, %c0_i32, %c0_i32_0 : i32, i32, i32
  }
  func.func @transform_20(%arg0: i32) -> (i32, i32, i32) {
    %c0_i32 = arith.constant 0 : i32
    %c0_i32_0 = arith.constant 0 : i32
    %c0_i32_1 = arith.constant 0 : i32
    return %arg0, %c0_i32, %c0_i32_0 : i32, i32, i32
  }
  func.func @transform_21(%arg0: i32) -> (i32, i32, i32) {
    %c0_i32 = arith.constant 0 : i32
    %c0_i32_0 = arith.constant 0 : i32
    %c0_i32_1 = arith.constant 0 : i32
    return %arg0, %c0_i32, %c0_i32_0 : i32, i32, i32
  }
  func.func @transform_22(%arg0: i32) -> (i32, i32) {
    %c0_i32 = arith.constant 0 : i32
    %c0_i32_0 = arith.constant 0 : i32
    %c0_i32_1 = arith.constant 0 : i32
    return %c0_i32, %c0_i32_0 : i32, i32
  }
  func.func @transform_23(%arg0: i32) -> (i32, i32) {
    %c0_i32 = arith.constant 0 : i32
    %c0_i32_0 = arith.constant 0 : i32
    %c0_i32_1 = arith.constant 0 : i32
    return %c0_i32, %c0_i32_0 : i32, i32
  }
  func.func @transform_24(%arg0: i32) -> (i32, i32) {
    %c0_i32 = arith.constant 0 : i32
    %c0_i32_0 = arith.constant 0 : i32
    %c0_i32_1 = arith.constant 0 : i32
    return %c0_i32, %c0_i32_0 : i32, i32
  }
}

</mosaic_0001>

<bundles_post_ra>
// kernel: bert_dual_heads_forward.1
= control target key start
LH: loop header
LB: loop body
LE: loop exit
PB: predicated region body
PF: predicated region fallthrough
CT: control target
= control target key end

     0   :  { %s2982_s0 = inlined_call_operand.vmem [shape: f32[2,8,32], index: 0, kind: input, shape index: {}]   ;;  %s2983_s1 = inlined_call_operand.vmem [shape: f32[8,32], index: 1, kind: input, shape index: {}]   ;;  %s2984_s2 = inlined_call_operand.vmem [shape: f32[1,32], index: 2, kind: input, shape index: {}]   ;;  %s2985_s3 = inlined_call_operand.vmem [shape: f32[1,32], index: 3, kind: input, shape index: {}]   ;;  %s2986_s4 = inlined_call_operand.vmem [shape: f32[1,32], index: 4, kind: input, shape index: {}]   ;;  %s2987_s5 = inlined_call_operand.vmem [shape: f32[2,1,8], index: 5, kind: input, shape index: {}]   ;;  %s2988_s6 = inlined_call_operand.vmem [shape: bf16[2,32,32], index: 6, kind: input, shape index: {}]   ;;  %s2989_s7 = inlined_call_operand.vmem [shape: f32[2,1,32], index: 7, kind: input, shape index: {}]   ;;  %s2990_s8 = inlined_call_operand.vmem [shape: bf16[2,32,32], index: 8, kind: input, shape index: {}]   ;;  %s2991_s9 = inlined_call_operand.vmem [shape: f32[2,1,32], index: 9, kind: input, shape index: {}]   ;;  %s2992_s10 = inlined_call_operand.vmem [shape: bf16[2,32,32], index: 10, kind: input, shape index: {}]   ;;  %s2993_s11 = inlined_call_operand.vmem [shape: f32[2,1,32], index: 11, kind: input, shape index: {}]   ;;  %s2994_s12 = inlined_call_operand.vmem [shape: bf16[2,32,32], index: 12, kind: input, shape index: {}]   ;;  %s2995_s13 = inlined_call_operand.vmem [shape: f32[2,1,32], index: 13, kind: input, shape index: {}]   ;;  %s2996_s14 = inlined_call_operand.vmem [shape: f32[2,1,32], index: 14, kind: input, shape index: {}]   ;;  %s2997_s15 = inlined_call_operand.vmem [shape: f32[2,1,32], index: 15, kind: input, shape index: {}]   ;;  %s2998_s16 = inlined_call_operand.vmem [shape: bf16[2,32,64], index: 16, kind: input, shape index: {}]   ;;  %s2999_s17 = inlined_call_operand.vmem [shape: f32[2,1,64], index: 17, kind: input, shape index: {}]   ;;  %s3000_s18 = inlined_call_operand.vmem [shape: bf16[2,64,32], index: 18, kind: input, shape index: {}]   ;;  %s3001_s19 = inlined_call_operand.vmem [shape: f32[2,1,32], index: 19, kind: input, shape index: {}]   ;;  %s3002_s20 = inlined_call_operand.vmem [shape: f32[2,1,32], index: 20, kind: input, shape index: {}]   ;;  %s3003_s21 = inlined_call_operand.vmem [shape: f32[2,1,32], index: 21, kind: input, shape index: {}]   ;;  %s3004_s22 = inlined_call_operand.vmem [shape: bf16[32,128], index: 22, kind: input, shape index: {}]   ;;  %s3005_s23 = inlined_call_operand.vmem [shape: f32[1,128], index: 23, kind: input, shape index: {}]   ;;  %s3006_s24 = inlined_call_operand.vmem [shape: f32[2,128], index: 24, kind: output, shape index: {}]  }
   0x1   :  { %3009 = sst [smem:[#allocation3_spill]] %s2982_s0 }
   0x2   :  { %3010 = sst [smem:[#allocation4_spill]] %s2983_s1 }
   0x3   :  { %3011 = sst [smem:[#allocation5_spill]] %s2984_s2 }
   0x4   :  { %3012 = sst [smem:[#allocation6_spill]] %s2985_s3 }
   0x5   :  { %3013 = sst [smem:[#allocation7_spill]] %s2986_s4 }
   0x6   :  { %3014 = sst [smem:[#allocation8_spill]] %s2987_s5  ;;  %s2720_s5 = smov 0  }
   0x7   :  { %3015 = sst [smem:[#allocation9_spill]] %s2988_s6 }
   0x8   :  { %3016 = sst [smem:[#allocation10_spill]] %s2989_s7 }
   0x9   :  { %3017 = sst [smem:[#allocation11_spill]] %s2990_s8 }
   0xa LB: > { %s2726_s26 = sadd.s32 4294967295, %s2587_s5   ;;  %p2298_p0 = scmp.ge.s32.totalorder %s2587_s5, 1  ;;  %s2587_s5 = sphi %s2720_s5, %s34_s5  }
   0xb   : > { %p787_p1 = scmp.lt.s32.totalorder %s2587_s5, 3 }
   0xd   : > { %p788_p2 = pnand %p2298_p0, %p787_p1 }
   0xe   : > { %s3018_s6 = sld [smem:[#allocation3_spill]] (!%p788_p2)  ;;  %s3019_s0 = sld [smem:[#allocation4_spill]] (!%p788_p2)  ;;  %vm980_vm0 = vcmask (!%p788_p2), 261120   ;;  %v2589_v21 = vmov (!%p788_p2), 0.0   ;;  %vm2590_vm1 = vmmov (!%p788_p2), 0   ;;  %v1025_v41 = vld [vmem:[#allocation2] sm:$0xff] (!%p788_p2) }
   0xf   : > { %791 = sbr.rel (%p788_p2) target bundleno = 3513 (0xdb9), region = 116  ;;  %s3020_s3 = sld [smem:[#allocation5_spill]] (!%p788_p2)  ;;  %2406 = vmatprep.subr.bf16.mxu0 (!%p788_p2), %v2589_v21  ;;  %2414 = vmatprep.subr.bf16.mxu1 (!%p788_p2), %v2589_v21  ;;  %v1026_v42 = vld [vmem:[#allocation2 + $0x8] sm:$0xff] (!%p788_p2)  ;;  %vm1236_vm3 = vcmask (!%p788_p2), 130048   ;;  %vm1373_vm4 = vcmask (!%p788_p2), 1043456   ;;  %vm1345_vm5 = vcmask (!%p788_p2), 64512  }
  0x10   : > { %p903_p3 = scmp.lt.s32.totalorder (!%p788_p2), %s2726_s26, 1  ;;  %s3021_s2 = sld [smem:[#allocation9_spill]] (!%p788_p2)  ;;  %2410 = vmatprep.mubr.msk.bf16.mxu0 (!%p788_p2), %vm2590_vm1, %v2589_v21  ;;  %2418 = vmatprep.mubr.msk.bf16.mxu1 (!%p788_p2), %vm2590_vm1, %v2589_v21  ;;  %vm1943_vm6 = vcmask (!%p788_p2), 523264  }
  0x11   : > { %s3022_s30 = sld [smem:[#allocation11_spill]] (!%p788_p2)  ;;  %p1024_p4 = scmp.eq.s32.totalorder (!%p788_p2), %s2726_s26, 0 }
  0x12   : > { %p2354_p5 = scmp.ne.s32.totalorder (!%p788_p2), %s2726_s26, 1 }
  0x14   : > { %v964_v0 = vld [vmem:[%s3018_s6] sm:$0xff] (!%p788_p2)  ;;  %v965_v4 = vld [vmem:[%s3018_s6 + $0x8] sm:$0xff] (!%p788_p2) }
  0x15   : > { %v966_v1 = vld [vmem:[%s3019_s0] sm:$0xff] (!%p788_p2) }
  0x16   : > { %v2311_v2 = vld [vmem:[%s3020_s3] ss:$0 sm:$0xff]  ;;  %v967_v3 = vadd.f32 %v966_v1, %v964_v0  ;;  %v968_v5 = vadd.f32 %v966_v1, %v965_v4  ;;  %s2748_s4 = scalar_select %p903_p3, %s2726_s26, 1 }
  0x17   : > { %s1027_s0 = scalar_select %p1024_p4, 1, 0 }
  0x18   : > { %v976_v6 = vadd.f32 %v2311_v2, %v967_v3  ;;  %v977_v7 = vadd.f32 %v2311_v2, %v968_v5  ;;  %s2751_s1 = sshll.u32 %s2748_s4, 4  ;;  %s934_s28 = scalar_lea.vmem %s2995_s13, %s2748_s4  ;;  %vm2594_vm7 = vmmov (!%p2354_p5), 0   ;;  %vm2058_vm8 = vcmask (!%p2354_p5), 1041409  }
  0x19   : > { %s907_s29 = scalar_lea.vmem %s3021_s2, %s2751_s1  ;;  %s915_s3 = scalar_lea.vmem %s3022_s30, %s2751_s1  ;;  %v1028_v38 = vstv %s1027_s0 }
  0x1a   : > { %v981_v8 = vsel %vm980_vm0, %v976_v6, 0.0  ;;  %v984_v9 = vsel %vm980_vm0, %v977_v7, 0.0  ;;  %v2533_v20 = vld [vmem:[%s907_s29] sm:$0xff]   ;;  %v2535_v23 = vld [vmem:[%s907_s29 + $0x8] sm:$0xff]   ;;  %s2774_s27 = scalar_lea.vmem %s2992_s10, %s2751_s1  ;;  %s3023_s29 = sld [smem:[#allocation6_spill]]  ;;  %vm1029_vm2 = vcmp.eq.s32.totalorder %v1028_v38, 1 }
  0x1b   : > { %982 = vadd.xlane.f32.xlu0 %v981_v8  ;;  %v2534_v22 = vld [vmem:[%s915_s3] sm:$0xff]   ;;  %2407 = vmatpush3.bf16.msra.mxu0 %v2533_v20  ;;  %v2536_v24 = vld [vmem:[%s915_s3 + $0x8] sm:$0xff]   ;;  %s3024_s3 = sld [smem:[#allocation7_spill]]  ;;  %s931_s30 = scalar_lea.vmem %s2994_s12, %s2751_s1 }
  0x1c   : > { %2415 = vmatpush3.bf16.msra.mxu1 %v2534_v22  ;;  %2408 = vmatprep.subr.bf16.mxu0 %v2589_v21  ;;  %v2537_v46 = vld [vmem:[%s2774_s27] sm:$0xff]   ;;  %v2538_v48 = vld [vmem:[%s2774_s27 + $0x8] sm:$0xff]   ;;  %s918_s27 = scalar_lea.vmem %s2991_s9, %s2748_s4  ;;  %s940_s8 = scalar_lea.vmem %s2997_s15, %s2748_s4 }
  0x1d   : > { %2416 = vmatprep.subr.bf16.mxu1 %v2589_v21  ;;  %v2318_v49 = vld [vmem:[%s918_s27] ss:$0 sm:$0xff]  ;;  %s3026_s27 = sld [smem:[#allocation8_spill]] }
  0x1f   : > { %985 = vadd.xlane.f32.xlu0 %v984_v9  ;;  %2409 = vmatpush3.bf16.msra.mxu0 %v2535_v23 }
  0x20   : > { %2417 = vmatpush3.bf16.msra.mxu1 %v2536_v24  ;;  %2422 = vmatprep.subr.bf16.mxu0 %v2589_v21  ;;  %v2312_v32 = vld [vmem:[%s3023_s29] ss:$0 sm:$0xff]  ;;  %s3025_s29 = sld [smem:[#allocation10_spill]] }
  0x21   : > { %2430 = vmatprep.subr.bf16.mxu1 %v2589_v21  ;;  %v2313_v36 = vld [vmem:[%s3024_s3] ss:$0 sm:$0xff]  ;;  %s926_s3 = scalar_lea.vmem %s2993_s11, %s2748_s4 }
  0x22   : > { %v2322_v0 = vld [vmem:[%s926_s3] ss:$0 sm:$0xff]  ;;  %s2592_s3 = smov 16  }
  0x23   : > { %v2846_v23 = vld [vmem:[%s3026_s27 + $0x1] ss:$0 sm:$0xff] }
  0x26   : > { %s910_s0 = scalar_lea.vmem %s3025_s29, %s2748_s4  ;;  %s2591_s29 = smov 112  }
  0x27   : > { %v2314_v61 = vld [vmem:[%s910_s0] ss:$0 sm:$0xff]  ;;  %s945_s0 = scalar_lea.vmem %s2998_s16, %s2751_s1  ;;  %s937_s1 = scalar_lea.vmem %s2996_s14, %s2748_s4 }
  0xa8   : > { %v983_v10 = vpop.xlane.xlu0 %982 }
  0xa9   : > { %v988_v11 = vmul.f32 0.03125, %v983_v10 }
  0xab   : > { %v990_v12 = vsub.f32 %v976_v6, %v988_v11 }
  0xac   : > { %v986_v13 = vpop.xlane.xlu0 %985 }
  0xad   : > { %v989_v14 = vmul.f32 0.03125, %v986_v13  ;;  %v992_v15 = vmul.f32 %v990_v12, %v990_v12 }
  0xaf   : > { %v991_v16 = vsub.f32 %v977_v7, %v989_v14  ;;  %v994_v17 = vsel %vm980_vm0, %v992_v15, 0.0 }
  0xb0   : > { %995 = vadd.xlane.f32.xlu1 %v994_v17  ;;  %v2841_v17 = vld [vmem:[%s3026_s27] ss:$0 sm:$0xff] }
  0xb1   : > { %v993_v18 = vmul.f32 %v991_v16, %v991_v16 }
  0xb3   : > { %v997_v19 = vsel %vm980_vm0, %v993_v18, 0.0 }
  0xb4   : > { %998 = vadd.xlane.f32.xlu1 %v997_v19 }
 0x13d   : > { %v996_v25 = vpop.xlane.xlu1 %995 }
 0x13e   : > { %v1000_v26 = vmul.f32 0.03125, %v996_v25 }
 0x140   : > { %v1002_v27 = vadd.f32 1e-12, %v1000_v26 }
 0x141   : > { %v999_v28 = vpop.xlane.xlu1 %998 }
 0x142   : > { %2547 = vrsqrt.f32 %v1002_v27  ;;  %v1001_v29 = vmul.f32 0.03125, %v999_v28 }
 0x144   : > { %v1003_v30 = vadd.f32 1e-12, %v1001_v29 }
 0x146   : > { %2549 = vrsqrt.f32 %v1003_v30 }
 0x14c   : > { %v2548_v31 = vpop.eup %2547 }
 0x14d   : > { %v1006_v33 = vmul.f32 %v2548_v31, %v990_v12 }
 0x14f   : > { %v1014_v34 = vmul.f32 %v2312_v32, %v1006_v33 }
 0x150   : > { %v2550_v35 = vpop.eup %2549 }
 0x151   : > { %v1007_v37 = vmul.f32 %v2550_v35, %v991_v16  ;;  %v1022_v40 = vadd.f32 %v2313_v36, %v1014_v34 }
 0x153   : > { %v1015_v39 = vmul.f32 %v2312_v32, %v1007_v37  ;;  %v2784_v44 = vsel %vm1029_vm2, %v1022_v40, %v1025_v41 }
 0x155   : > { %v1023_v43 = vadd.f32 %v2313_v36, %v1015_v39 }
 0x157   : > { %v2786_v45 = vsel %vm1029_vm2, %v1023_v43, %v1026_v42 }
 0x158   : > { %v1032_v47 = vpack.c.bf16 %v2786_v45, %v2784_v44 }
 0x15a   : > { %2411 = vmatmul.mubr.msk.bf16.vlgmr.msra.gmra.mrb[0].mxu0 %vm980_vm0, %v1032_v47  ;;  %2419 = vmatmul.mubr.msk.bf16.vlgmr.msra.gmra.mrb[0].mxu1 %vm980_vm0, %v1032_v47 }
 0x15b   : > { %2423 = vmatpush3.bf16.msra.mxu0 %v2537_v46  ;;  %2426 = vmatprep.mubr.msk.bf16.mxu0 %vm2590_vm1, %v2589_v21 }
 0x15c   : > { %2424 = vmatprep.subr.bf16.mxu0 %v2589_v21  ;;  %2432 = vmatprep.mubr.msk.bf16.mxu1 %vm2590_vm1, %v2589_v21 }
 0x15f   : > { %2425 = vmatpush3.bf16.msra.mxu0 %v2538_v48 }
 0x160   : > { %2436 = vmatprep.subr.bf16.mxu0 %v2589_v21 }
 0x162   : > { %2427 = vmatmul.mubr.msk.bf16.vlgmr.msra.gmra.mrb[4].mxu0 %vm980_vm0, %v1032_v47 }
 0x163   : > { %2438 = vmatprep.mubr.msk.bf16.mxu0 %vm2590_vm1, %v2589_v21 }
 0x22d   : > { %v1093_v50 = vpop.f32.mrb[0].mxu0  ;;  %v1157_v51 = vpop.f32.mrb[0].mxu1 }
 0x22e   : > { %v1158_v52 = vadd.f32 %v2318_v49, %v1157_v51  ;;  %v2412_v53 = vpop.f32.mrb[1].mxu0  ;;  %v2420_v54 = vpop.f32.mrb[1].mxu1  ;;  %v1094_v1 = vadd.f32 %v2314_v61, %v1093_v50 }
 0x22f   : > { %v1096_v55 = vpop.f32.mrb[2].mxu0  ;;  %v1160_v56 = vpop.f32.mrb[2].mxu1 }
 0x230   : > { %v2811_v57 = vpack.c.bf16 %v1158_v52, %v1158_v52  ;;  %v1161_v58 = vadd.f32 %v2318_v49, %v1160_v56  ;;  %v2413_v59 = vpop.f32.mrb[3].mxu0  ;;  %v2421_v60 = vpop.f32.mrb[3].mxu1  ;;  %v1097_v4 = vadd.f32 %v2314_v61, %v1096_v55  ;;  %v1230_v8 = vpack.c.bf16 %v1094_v1, %v1094_v1 }
 0x232   : > { %v1241_v62 = vsel %vm1236_vm3, %v2811_v57, 0  ;;  %v1233_v63 = vpack.c.bf16 %v1161_v58, %v1161_v58  ;;  %v1231_v12 = vpack.c.bf16 %v1097_v4, %v1097_v4 }
 0x233   : > { %2431 = vmatpush3.bf16.xpose.msra.mxu1 %v1241_v62 }
 0x234   : > { %v1287_v2 = vsel %vm1236_vm3, %v1233_v63, 0  ;;  %2442 = vmatprep.subr.bf16.mxu1 %v2589_v21 }
 0x235   : > { %v1221_v3 = vpop.f32.mrb[4].mxu0  ;;  %2437 = vmatpush3.bf16.xpose.msra.mxu0 %v1287_v2 }
 0x236   : > { %v1222_v5 = vadd.f32 %v2322_v0, %v1221_v3  ;;  %v2428_v6 = vpop.f32.mrb[5].mxu0  ;;  %2448 = vmatprep.subr.bf16.mxu0 %v2589_v21 }
 0x237   : > { %v1224_v7 = vpop.f32.mrb[6].mxu0 }
 0x238   : > { %v2822_v9 = vpack.c.bf16 %v1222_v5, %v1222_v5  ;;  %v1225_v10 = vadd.f32 %v2322_v0, %v1224_v7  ;;  %v2429_v11 = vpop.f32.mrb[7].mxu0 }
 0x23a   : > { %v1375_v13 = vsel %vm1373_vm4, %v2822_v9, 0  ;;  %v2826_v14 = vpack.c.bf16 %v1225_v10, %v1225_v10  ;;  %2433 = vmatmul.mubr.msk.bf16.vlgmr.msra.gmra.mrb[4].mxu1 %vm1236_vm3, %v1230_v8 }
 0x23b   : > { %2443 = vmatpush3.bf16.msra.mxu1 %v1375_v13  ;;  %2444 = vmatprep.mubr.msk.bf16.mxu1 %vm2590_vm1, %v2589_v21 }
 0x23c   : > { %v1421_v15 = vsel %vm1373_vm4, %v2826_v14, 0  ;;  %2439 = vmatmul.mubr.msk.bf16.vlgmr.msra.gmra.mrb[8].mxu0 %vm1236_vm3, %v1231_v12  ;;  %2454 = vmatprep.subr.bf16.mxu1 %v2589_v21 }
 0x23d   : > { %2449 = vmatpush3.bf16.msra.mxu0 %v1421_v15  ;;  %2450 = vmatprep.mubr.msk.bf16.mxu0 %vm2590_vm1, %v2589_v21 }
 0x23e   : > { %2460 = vmatprep.subr.bf16.mxu0 %v2589_v21 }
 0x30d   : > { %v1277_v16 = vpop.f32.mrb[4].mxu1 }
 0x30e   : > { %v1329_v18 = vmul.f32 0.25, %v1277_v16  ;;  %v2434_v19 = vpop.f32.mrb[5].mxu1 }
 0x30f   : > { %v1280_v20 = vpop.f32.mrb[6].mxu1  ;;  %v1323_v22 = vpop.f32.mrb[8].mxu0 }
 0x310   : > { %v1330_v24 = vmul.f32 0.25, %v1323_v22  ;;  %v2435_v25 = vpop.f32.mrb[7].mxu1  ;;  %v2440_v26 = vpop.f32.mrb[9].mxu0  ;;  %v1343_v27 = vadd.f32 %v2841_v17, %v1329_v18 }
 0x311   : > { %v1326_v28 = vpop.f32.mrb[10].mxu0 }
 0x312   : > { %v2441_v29 = vpop.f32.mrb[11].mxu0  ;;  %v1346_v30 = vsel %vm1345_vm5, %v1343_v27, -inf  ;;  %v1344_v31 = vadd.f32 %v2846_v23, %v1330_v24 }
 0x313   : > { %1347 = vmax.xlane.f32.xlu0 %v1346_v30 }
 0x314   : > { %v1349_v32 = vsel %vm1345_vm5, %v1344_v31, -inf }
 0x315   : > { %1350 = vmax.xlane.f32.xlu1 %v1349_v32 }
 0x326   : > { %1519 = vrot.lane.b32.xlu1 %v1233_v63, %s2591_s29 }
 0x3a0   : > { %v1348_v33 = vpop.xlane.xlu0 %1347 }
 0x3a1   : > { %v1352_v34 = vsub.f32 %v1343_v27, %v1348_v33 }
 0x3a2   : > { %v1351_v35 = vpop.xlane.xlu1 %1350 }
 0x3a3   : > { %v1354_v36 = vmul.f32 1.442695, %v1352_v34  ;;  %v1353_v37 = vsub.f32 %v1344_v31, %v1351_v35 }
 0x3a5   : > { %2551 = vpow2.f32 %v1354_v36  ;;  %v1356_v38 = vmul.f32 1.442695, %v1353_v37 }
 0x3a6   : > { %v1520_v43 = vpop.permute.xlu1 %1519 }
 0x3a7   : > { %2553 = vpow2.f32 %v1356_v38  ;;  %v1525_v56 = vsel %vm1236_vm3, %v1520_v43, 0 }
 0x3af   : > { %v2552_v39 = vpop.eup %2551 }
 0x3b0   : > { %v1358_v40 = vsel %vm1345_vm5, %v2552_v39, 0.0 }
 0x3b1   : > { %v2554_v41 = vpop.eup %2553  ;;  %1359 = vadd.xlane.f32.xlu0 %v1358_v40  ;;  %v2539_v40 = vld [vmem:[%s931_s30] sm:$0xff]  }
 0x3b2   : > { %v1361_v42 = vsel %vm1345_vm5, %v2554_v41, 0.0 }
 0x3b3   : > { %1362 = vadd.xlane.f32.xlu1 %v1361_v42 }
 0x3c4   : > { %1464 = vrot.lane.b32.xlu1 %v1230_v8, %s2591_s29 }
 0x3c7   : > { %1467 = vrot.lane.b32.xlu0 %v2811_v57, %s2591_s29 }
 0x3c8   : > { %1516 = vrot.lane.b32.xlu1 %v1231_v12, %s2591_s29 }
 0x43e   : > { %v1360_v46 = vpop.xlane.xlu0 %1359 }
 0x43f   : > { %2555 = vrcp.f32 %v1360_v46 }
 0x440   : > { %v1363_v47 = vpop.xlane.xlu1 %1362 }
 0x441   : > { %2557 = vrcp.f32 %v1363_v47 }
 0x442   : > { %v1468_v51 = vpop.permute.xlu0 %1467 }
 0x443   : > { %v1473_v54 = vsel %vm1236_vm3, %v1468_v51, 0 }
 0x444   : > { %v1465_v57 = vpop.permute.xlu1 %1464 }
 0x448   : > { %v1517_v58 = vpop.permute.xlu1 %1516 }
 0x449   : > { %v2556_v48 = vpop.eup %2555 }
 0x44a   : > { %v1365_v49 = vmul.f32 %v2556_v48, %v2552_v39 }
 0x44b   : > { %v2558_v50 = vpop.eup %2557 }
 0x44c   : > { %v1367_v52 = vmul.f32 %v2558_v50, %v2554_v41  ;;  %v1368_v53 = vpack.c.bf16 %v1365_v49, %v1365_v49  ;;  %v2540_v41 = vld [vmem:[%s931_s30 + $0x8] sm:$0xff]   ;;  %s962_s30 = scalar_lea.vmem %s3003_s21, %s2748_s4 }
 0x44e   : > { %2445 = vmatmul.mubr.msk.bf16.vlgmr.msra.gmra.mrb[8].mxu1 %vm1345_vm5, %v1368_v53  ;;  %v1369_v55 = vpack.c.bf16 %v1367_v52, %v1367_v52 }
 0x44f   : > { %2455 = vmatpush3.bf16.xpose.msra.mxu1 %v1473_v54  ;;  %2456 = vmatprep.mubr.msk.bf16.mxu1 %vm2590_vm1, %v2589_v21 }
 0x450   : > { %2451 = vmatmul.mubr.msk.bf16.vlgmr.msra.gmra.mrb[12].mxu0 %vm1345_vm5, %v1369_v55  ;;  %2466 = vmatprep.subr.bf16.mxu1 %v2589_v21 }
 0x451   : > { %2461 = vmatpush3.bf16.xpose.msra.mxu0 %v1525_v56  ;;  %2462 = vmatprep.mubr.msk.bf16.mxu0 %vm2590_vm1, %v2589_v21 }
 0x452   : > { %2472 = vmatprep.subr.bf16.mxu0 %v2589_v21 }
 0x456   : > { %2457 = vmatmul.mubr.msk.bf16.vlgmr.msra.gmra.mrb[12].mxu1 %vm1236_vm3, %v1465_v57 }
 0x457   : > { %2468 = vmatprep.mubr.msk.bf16.mxu1 %vm2590_vm1, %v2589_v21 }
 0x458   : > { %2463 = vmatmul.mubr.msk.bf16.vlgmr.msra.gmra.mrb[16].mxu0 %vm1236_vm3, %v1517_v58 }
 0x459   : > { %2474 = vmatprep.mubr.msk.bf16.mxu0 %vm2590_vm1, %v2589_v21 }
 0x521   : > { %v2875_v59 = vpop.f32.mrb[8].mxu1 }
 0x522   : > { %v2446_v60 = vpop.f32.mrb[9].mxu1 }
 0x523   : > { %v1414_v61 = vpop.f32.mrb[10].mxu1  ;;  %v2877_v62 = vpop.f32.mrb[12].mxu0  ;;  %v2336_v60 = vld [vmem:[%s934_s28] ss:$0 sm:$0xff]  ;;  %s2366_s28 = sshll.u32 %s2748_s4, 5 }
 0x524   : > { %v2447_v63 = vpop.f32.mrb[11].mxu1  ;;  %v2452_v0 = vpop.f32.mrb[13].mxu0 }
 0x525   : > { %v1460_v1 = vpop.f32.mrb[14].mxu0 }
 0x526   : > { %v2453_v2 = vpop.f32.mrb[15].mxu0 }
 0x529   : > { %v1509_v3 = vpop.f32.mrb[12].mxu1 }
 0x52a   : > { %v1567_v4 = vmul.f32 0.25, %v1509_v3  ;;  %v2458_v5 = vpop.f32.mrb[13].mxu1 }
 0x52b   : > { %v1512_v6 = vpop.f32.mrb[14].mxu1  ;;  %v1561_v7 = vpop.f32.mrb[16].mxu0 }
 0x52c   : > { %v1568_v8 = vmul.f32 0.25, %v1561_v7  ;;  %v2459_v10 = vpop.f32.mrb[15].mxu1  ;;  %v2464_v11 = vpop.f32.mrb[17].mxu0  ;;  %v1569_v12 = vadd.f32 %v2841_v17, %v1567_v4 }
 0x52d   : > { %v1564_v13 = vpop.f32.mrb[18].mxu0 }
 0x52e   : > { %v2465_v15 = vpop.f32.mrb[19].mxu0  ;;  %v1571_v16 = vsel %vm1345_vm5, %v1569_v12, -inf  ;;  %v1570_v18 = vadd.f32 %v2846_v23, %v1568_v8 }
 0x52f   : > { %1572 = vmax.xlane.f32.xlu0 %v1571_v16 }
 0x530   : > { %v1574_v19 = vsel %vm1345_vm5, %v1570_v18, -inf }
 0x531   : > { %1575 = vmax.xlane.f32.xlu1 %v1574_v19 }
 0x542   : > { %1645 = vrot.lane.b32.xlu1 %v2826_v14, %s2591_s29 }
 0x5bc   : > { %v1573_v20 = vpop.xlane.xlu0 %1572 }
 0x5bd   : > { %v1577_v22 = vsub.f32 %v1569_v12, %v1573_v20 }
 0x5be   : > { %v1576_v24 = vpop.xlane.xlu1 %1575 }
 0x5bf   : > { %v1579_v25 = vmul.f32 1.442695, %v1577_v22  ;;  %v1578_v26 = vsub.f32 %v1570_v18, %v1576_v24  ;;  %v2542_v18 = vld [vmem:[%s945_s0 + $0x8] sm:$0xff]  }
 0x5c1   : > { %2559 = vpow2.f32 %v1579_v25  ;;  %v1581_v17 = vmul.f32 1.442695, %v1578_v26 }
 0x5c2   : > { %v1646_v27 = vpop.permute.xlu1 %1645 }
 0x5c3   : > { %2561 = vpow2.f32 %v1581_v17  ;;  %v1651_v28 = vsel %vm1373_vm4, %v1646_v27, 0 }
 0x5c4   : > { %2473 = vmatpush3.bf16.msra.mxu0 %v1651_v28  ;;  %v2340_v28 = vld [vmem:[%s937_s1] ss:$0 sm:$0xff]  ;;  %s948_s1 = scalar_lea.vmem %s2999_s17, %s2748_s4 }
 0x5c5   : > { %2486 = vmatprep.subr.bf16.mxu0 %v2589_v21 }
 0x5cb   : > { %v2560_v23 = vpop.eup %2559 }
 0x5cc   : > { %v1583_v29 = vsel %vm1345_vm5, %v2560_v23, 0.0 }
 0x5cd   : > { %v2562_v30 = vpop.eup %2561  ;;  %1584 = vadd.xlane.f32.xlu0 %v1583_v29 }
 0x5ce   : > { %v1586_v14 = vsel %vm1345_vm5, %v2562_v30, 0.0 }
 0x5d1   : > { %1587 = vadd.xlane.f32.xlu0 %v1586_v14  ;;  %v2341_v14 = vld [vmem:[%s940_s8] ss:$0 sm:$0xff]  ;;  %s956_s8 = scalar_lea.vmem %s3001_s19, %s2748_s4 }
 0x5e7   : > { %1596 = vrot.lane.b32.xlu0 %v2822_v9, %s2591_s29  ;;  %s959_s29 = scalar_lea.vmem %s3002_s20, %s2748_s4 }
 0x65a   : > { %v1585_v31 = vpop.xlane.xlu0 %1584 }
 0x65b   : > { %2563 = vrcp.f32 %v1585_v31 }
 0x65e   : > { %v1588_v32 = vpop.xlane.xlu0 %1587 }
 0x65f   : > { %2565 = vrcp.f32 %v1588_v32 }
 0x662   : > { %v1597_v33 = vpop.permute.xlu0 %1596 }
 0x663   : > { %v1602_v34 = vsel %vm1373_vm4, %v1597_v33, 0 }
 0x664   : > { %2467 = vmatpush3.bf16.msra.mxu1 %v1602_v34 }
 0x665   : > { %v2564_v35 = vpop.eup %2563  ;;  %2478 = vmatprep.subr.bf16.mxu1 %v2589_v21 }
 0x666   : > { %v1590_v36 = vmul.f32 %v2564_v35, %v2560_v23 }
 0x668   : > { %v1593_v37 = vpack.c.bf16 %v1590_v36, %v1590_v36 }
 0x669   : > { %v2566_v38 = vpop.eup %2565 }
 0x66a   : > { %v1592_v39 = vmul.f32 %v2566_v38, %v2562_v30  ;;  %2469 = vmatmul.mubr.msk.bf16.vlgmr.msra.gmra.mrb[16].mxu1 %vm1345_vm5, %v1593_v37 }
 0x66b   : > { %2482 = vmatprep.mubr.msk.bf16.mxu1 %vm2590_vm1, %v2589_v21  ;;  %2479 = vmatpush3.bf16.msra.mxu1 %v2539_v40 }
 0x66c   : > { %v1594_v9 = vpack.c.bf16 %v1592_v39, %v1592_v39  ;;  %2480 = vmatprep.subr.bf16.mxu1 %v2589_v21  ;;  %v2342_v39 = vld [vmem:[%s948_s1] ss:$0 sm:$0xff] }
 0x66e   : > { %2475 = vmatmul.mubr.msk.bf16.vlgmr.msra.gmra.mrb[20].mxu0 %vm1345_vm5, %v1594_v9 }
 0x66f   : > { %2490 = vmatprep.mubr.msk.bf16.mxu0 %vm2590_vm1, %v2589_v21  ;;  %2481 = vmatpush3.bf16.msra.mxu1 %v2540_v41 }
 0x670   : > { %2494 = vmatprep.subr.bf16.mxu1 %v2589_v21 }
 0x73d   : > { %v1638_v42 = vpop.f32.mrb[16].mxu1 }
 0x73e   : > { %v2470_v43 = vpop.f32.mrb[17].mxu1 }
 0x73f   : > { %v1641_v46 = vpop.f32.mrb[18].mxu1 }
 0x740   : > { %v2471_v47 = vpop.f32.mrb[19].mxu1 }
 0x741   : > { %v1687_v48 = vpop.f32.mrb[20].mxu0 }
 0x742   : > { %v2528_v49 = vpack.i.bf16 %v1687_v48, %v1638_v42  ;;  %v2476_v50 = vpop.f32.mrb[21].mxu0 }
 0x743   : > { %v1690_v51 = vpop.f32.mrb[22].mxu0 }
 0x744   : > { %2529 = vrot.lane.b32.xlu1 %v2528_v49, %s2592_s3  ;;  %v2477_v52 = vpop.f32.mrb[23].mxu0 }
 0x7b6   : > { %v2530_v53 = vpop.permute.xlu1 %2529 }
 0x7b7   : > { %v2532_v54 = vunpack.i.h.bf16 %v2530_v53  ;;  %v2531_v55 = vunpack.i.l.bf16 %v2530_v53 }
 0x7b9   : > { %v1702_v56 = vsel %vm1236_vm3, %v2877_v62, %v2532_v54  ;;  %v1701_v57 = vsel %vm1236_vm3, %v2875_v59, %v2531_v55 }
 0x7ba   : > { %v1703_v58 = vpack.c.bf16 %v1702_v56, %v1701_v57 }
 0x7bc   : > { %2483 = vmatmul.mubr.msk.bf16.vlgmr.msra.gmra.mrb[20].mxu1 %vm980_vm0, %v1703_v58 }
 0x7bd   : > { %2502 = vmatprep.mubr.msk.bf16.mxu1 %vm2590_vm1, %v2589_v21 }
 0x88f   : > { %v1764_v61 = vpop.f32.mrb[20].mxu1 }
 0x890   : > { %v1765_v63 = vadd.f32 %v2336_v60, %v1764_v61  ;;  %v2484_v0 = vpop.f32.mrb[21].mxu1 }
 0x891   : > { %v1767_v1 = vpop.f32.mrb[22].mxu1 }
 0x892   : > { %v1768_v2 = vadd.f32 %v2336_v60, %v1767_v1  ;;  %v2485_v62 = vpop.f32.mrb[23].mxu1  ;;  %v1771_v3 = vadd.f32 %v1765_v63, %v2784_v44 }
 0x893   : > { %v2346_v62 = vld [vmem:[%s956_s8] ss:$0 sm:$0xff] }
 0x894   : > { %v1775_v59 = vsel %vm980_vm0, %v1771_v3, 0.0  ;;  %v1772_v4 = vadd.f32 %v1768_v2, %v2786_v45  ;;  %v2541_v45 = vld [vmem:[%s945_s0] sm:$0xff]   ;;  %s953_s0 = scalar_lea.vmem %s3000_s18, %s2366_s28 }
 0x895   : > { %1776 = vadd.xlane.f32.xlu1 %v1775_v59  ;;  %2487 = vmatpush3.bf16.msra.mxu0 %v2541_v45  ;;  %v2543_v35 = vld [vmem:[%s953_s0] sm:$0xff]   ;;  %v2544_v36 = vld [vmem:[%s953_s0 + $0x8] sm:$0xff]   ;;  %v2545_v37 = vld [vmem:[%s953_s0 + $0x10] sm:$0xff]  }
 0x896   : > { %v1778_v5 = vsel %vm980_vm0, %v1772_v4, 0.0  ;;  %2488 = vmatprep.subr.bf16.mxu0 %v2589_v21  ;;  %2495 = vmatpush3.bf16.msra.mxu1 %v2543_v35  ;;  %v2546_v38 = vld [vmem:[%s953_s0 + $0x18] sm:$0xff]  }
 0x897   : > { %1779 = vadd.xlane.f32.xlu0 %v1778_v5  ;;  %2496 = vmatprep.subr.bf16.mxu1 %v2589_v21 }
 0x899   : > { %2489 = vmatpush3.bf16.msra.mxu0 %v2542_v18 }
 0x89a   : > { %2497 = vmatpush3.bf16.msra.mxu1 %v2544_v36 }
 0x89b   : > { %2498 = vmatprep.subr.bf16.mxu1 %v2589_v21 }
 0x89e   : > { %2499 = vmatpush3.bf16.msra.mxu1 %v2545_v37 }
 0x89f   : > { %2500 = vmatprep.subr.bf16.mxu1 %v2589_v21 }
 0x8a2   : > { %2501 = vmatpush3.bf16.msra.mxu1 %v2546_v38  ;;  %v2579_v38 = vld [vmem:[%s3004_s22] sm:$0xff] (!%p2354_p5)  }
 0x922   : > { %v1777_v6 = vpop.xlane.xlu1 %1776 }
 0x923   : > { %v1781_v7 = vmul.f32 0.03125, %v1777_v6 }
 0x924   : > { %v1780_v8 = vpop.xlane.xlu0 %1779 }
 0x925   : > { %v1783_v10 = vsub.f32 %v1771_v3, %v1781_v7  ;;  %v1782_v11 = vmul.f32 0.03125, %v1780_v8 }
 0x927   : > { %v1784_v12 = vsub.f32 %v1772_v4, %v1782_v11  ;;  %v1785_v13 = vmul.f32 %v1783_v10, %v1783_v10 }
 0x929   : > { %v1787_v15 = vsel %vm980_vm0, %v1785_v13, 0.0  ;;  %v1786_v16 = vmul.f32 %v1784_v12, %v1784_v12 }
 0x92a   : > { %1788 = vadd.xlane.f32.xlu0 %v1787_v15 }
 0x92b   : > { %v1790_v44 = vsel %vm980_vm0, %v1786_v16, 0.0 }
 0x92e   : > { %1791 = vadd.xlane.f32.xlu0 %v1790_v44 }
 0x9b7   : > { %v1789_v19 = vpop.xlane.xlu0 %1788 }
 0x9b8   : > { %v1793_v20 = vmul.f32 0.03125, %v1789_v19 }
 0x9ba   : > { %v1795_v22 = vadd.f32 1e-12, %v1793_v20 }
 0x9bb   : > { %v1792_v24 = vpop.xlane.xlu0 %1791 }
 0x9bc   : > { %2567 = vrsqrt.f32 %v1795_v22  ;;  %v1794_v25 = vmul.f32 0.03125, %v1792_v24 }
 0x9be   : > { %v1796_v26 = vadd.f32 1e-12, %v1794_v25 }
 0x9c0   : > { %2569 = vrsqrt.f32 %v1796_v26 }
 0x9c6   : > { %v2568_v17 = vpop.eup %2567 }
 0x9c7   : > { %v1799_v27 = vmul.f32 %v2568_v17, %v1783_v10 }
 0x9c9   : > { %v1807_v29 = vmul.f32 %v2340_v28, %v1799_v27 }
 0x9ca   : > { %v2570_v23 = vpop.eup %2569 }
 0x9cb   : > { %v1800_v30 = vmul.f32 %v2570_v23, %v1784_v12  ;;  %v1815_v32 = vadd.f32 %v2341_v14, %v1807_v29 }
 0x9cd   : > { %v1808_v31 = vmul.f32 %v2340_v28, %v1800_v30  ;;  %v2352_v30 = vld [vmem:[%s959_s29] ss:$0 sm:$0xff] }
 0x9cf   : > { %v1816_v33 = vadd.f32 %v2341_v14, %v1808_v31 }
 0x9d1   : > { %v1817_v34 = vpack.c.bf16 %v1816_v33, %v1815_v32 }
 0x9d3   : > { %2491 = vmatmul.mubr.msk.bf16.vlgmr.msra.gmra.mrb[24].mxu0 %vm980_vm0, %v1817_v34 }
 0xaa6   : > { %v1878_v9 = vpop.f32.mrb[24].mxu0 }
 0xaa7   : > { %v1879_v40 = vadd.f32 %v2342_v39, %v1878_v9  ;;  %v2492_v41 = vpop.f32.mrb[25].mxu0 }
 0xaa8   : > { %v1881_v42 = vpop.f32.mrb[26].mxu0  ;;  %v2580_v41 = vld [vmem:[%s3004_s22 + $0x8] sm:$0xff] (!%p2354_p5)  }
 0xaa9   : > { %v1887_v43 = vmul.f32 0.044715, %v1879_v40  ;;  %v1882_v46 = vadd.f32 %v2342_v39, %v1881_v42  ;;  %v2493_v47 = vpop.f32.mrb[27].mxu0  ;;  %v1885_v60 = vmul.f32 0.5, %v1879_v40 }
 0xaab   : > { %v1889_v48 = vmul.f32 %v1887_v43, %v1879_v40  ;;  %v1888_v49 = vmul.f32 0.044715, %v1882_v46  ;;  %v1886_v61 = vmul.f32 0.5, %v1882_v46 }
 0xaad   : > { %v1891_v50 = vmul.f32 %v1889_v48, %v1879_v40  ;;  %v1890_v51 = vmul.f32 %v1888_v49, %v1882_v46  ;;  %v2355_v49 = vld [vmem:[%s3005_s23] ss:$0 sm:$0xff] (!%p2354_p5) }
 0xaaf   : > { %v1893_v52 = vadd.f32 %v1891_v50, %v1879_v40  ;;  %v1892_v53 = vmul.f32 %v1890_v51, %v1882_v46  ;;  %v2593_v40 = vmov (!%p2354_p5), 0.0  }
 0xab0   : > { %2506 = vmatprep.subr.bf16.mxu0 (!%p2354_p5), %v2593_v40  ;;  %2510 = vmatprep.mubr.msk.bf16.mxu0 (!%p2354_p5), %vm2594_vm7, %v2593_v40 }
 0xab1   : > { %v1895_v21 = vmul.f32 0.7978846, %v1893_v52  ;;  %v1894_v54 = vadd.f32 %v1892_v53, %v1882_v46  ;;  %2507 = vmatpush3.bf16.msra.mxu0 (!%p2354_p5), %v2579_v38 }
 0xab2   : > { %2508 = vmatprep.subr.bf16.mxu0 (!%p2354_p5), %v2593_v40 }
 0xab3   : > { %2571 = vtanh.f32 %v1895_v21  ;;  %v1896_v55 = vmul.f32 0.7978846, %v1894_v54 }
 0xab5   : > { %2573 = vtanh.f32 %v1896_v55  ;;  %2509 = vmatpush3.bf16.msra.mxu0 (!%p2354_p5), %v2580_v41 }
 0xabd   : > { %v2572_v56 = vpop.eup %2571 }
 0xabe   : > { %v1899_v57 = vadd.f32 1.0, %v2572_v56 }
 0xabf   : > { %v2574_v58 = vpop.eup %2573 }
 0xac0   : > { %v1900_v63 = vadd.f32 1.0, %v2574_v58  ;;  %v1901_v0 = vmul.f32 %v1899_v57, %v1885_v60 }
 0xac2   : > { %v1902_v1 = vmul.f32 %v1900_v63, %v1886_v61 }
 0xac4   : > { %v1903_v2 = vpack.c.bf16 %v1902_v1, %v1901_v0 }
 0xac6   : > { %2503 = vmatmul.mubr.msk.bf16.vlgmr.msra.gmra.mrb[24].mxu1 %vm1943_vm6, %v1903_v2 }
 0xb99   : > { %v1981_v3 = vpop.f32.mrb[24].mxu1 }
 0xb9a   : > { %v1982_v59 = vadd.f32 %v2346_v62, %v1981_v3  ;;  %v2504_v4 = vpop.f32.mrb[25].mxu1 }
 0xb9b   : > { %v1984_v5 = vpop.f32.mrb[26].mxu1 }
 0xb9c   : > { %v1985_v6 = vadd.f32 %v2346_v62, %v1984_v5  ;;  %v2505_v7 = vpop.f32.mrb[27].mxu1  ;;  %v1988_v8 = vadd.f32 %v1982_v59, %v1815_v32  ;;  %v2353_v32 = vld [vmem:[%s962_s30] ss:$0 sm:$0xff] }
 0xb9e   : > { %v1992_v10 = vsel %vm980_vm0, %v1988_v8, 0.0  ;;  %v1989_v11 = vadd.f32 %v1985_v6, %v1816_v33 }
 0xb9f   : > { %1993 = vadd.xlane.f32.xlu1 %v1992_v10 }
 0xba0   : > { %v1995_v12 = vsel %vm980_vm0, %v1989_v11, 0.0 }
 0xba1   : > { %1996 = vadd.xlane.f32.xlu0 %v1995_v12 }
 0xc2c   : > { %v1994_v13 = vpop.xlane.xlu1 %1993 }
 0xc2d   : > { %v1998_v15 = vmul.f32 0.03125, %v1994_v13 }
 0xc2e   : > { %v1997_v16 = vpop.xlane.xlu0 %1996 }
 0xc2f   : > { %v2000_v44 = vsub.f32 %v1988_v8, %v1998_v15  ;;  %v1999_v45 = vmul.f32 0.03125, %v1997_v16 }
 0xc31   : > { %v2001_v18 = vsub.f32 %v1989_v11, %v1999_v45  ;;  %v2002_v19 = vmul.f32 %v2000_v44, %v2000_v44 }
 0xc33   : > { %v2004_v20 = vsel %vm980_vm0, %v2002_v19, 0.0  ;;  %v2003_v22 = vmul.f32 %v2001_v18, %v2001_v18 }
 0xc34   : > { %2005 = vadd.xlane.f32.xlu1 %v2004_v20 }
 0xc35   : > { %v2007_v24 = vsel %vm980_vm0, %v2003_v22, 0.0 }
 0xc36   : > { %2008 = vadd.xlane.f32.xlu0 %v2007_v24 }
 0xcc1   : > { %v2006_v25 = vpop.xlane.xlu1 %2005 }
 0xcc2   : > { %v2010_v26 = vmul.f32 0.03125, %v2006_v25 }
 0xcc3   : > { %v2009_v17 = vpop.xlane.xlu0 %2008 }
 0xcc4   : > { %v2012_v27 = vadd.f32 1e-12, %v2010_v26  ;;  %v2011_v28 = vmul.f32 0.03125, %v2009_v17 }
 0xcc6   : > { %2575 = vrsqrt.f32 %v2012_v27  ;;  %v2013_v23 = vadd.f32 1e-12, %v2011_v28 }
 0xcc8   : > { %2577 = vrsqrt.f32 %v2013_v23 }
 0xcd0   : > { %v2576_v29 = vpop.eup %2575 }
 0xcd1   : > { %v2016_v14 = vmul.f32 %v2576_v29, %v2000_v44 }
 0xcd2   : > { %v2578_v31 = vpop.eup %2577 }
 0xcd3   : > { %v2024_v33 = vmul.f32 %v2352_v30, %v2016_v14  ;;  %v2017_v34 = vmul.f32 %v2578_v31, %v2001_v18  ;;  %2039 = sbr.rel (%p2354_p5) target bundleno = 3513 (0xdb9), region = 120 }
 0xcd5   : > { %v2032_v35 = vadd.f32 %v2353_v32, %v2024_v33  ;;  %v2025_v36 = vmul.f32 %v2352_v30, %v2017_v34 }
 0xcd7   : > { %2034 = vst.msk [vmem:[#allocation2] sm:$0xff] %vm980_vm0, %v2032_v35  ;;  %v2033_v37 = vadd.f32 %v2353_v32, %v2025_v36  ;;  %v2040_v39 = vpack.c.bf16 (!%p2354_p5), %v2032_v35, %v2032_v35 }
 0xcd9   : > { %2035 = vst.msk [vmem:[#allocation2 + $0x8] sm:$0xff] %vm980_vm0, %v2033_v37  ;;  %v2041_v9 = vpack.c.bf16 (!%p2354_p5), %v2033_v37, %v2033_v37  ;;  %v2055_v42 = vunpack.c.l.b16 (!%p2354_p5), %v2040_v39 }
 0xcdb   : > { %v2056_v43 = vunpack.c.l.b16 %v2041_v9 }
 0xcdd   : > { %v2057_v46 = vrot.slane %v2056_v43, 7 }
 0xcdf   : > { %v2059_v47 = vsel %vm2058_vm8, %v2057_v46, %v2055_v42 }
 0xce0   : > { %v2060_v48 = vpack.c.b16 %v2059_v47, %v2059_v47 }
 0xce2   : > { %2511 = vmatmul.mubr.msk.bf16.vlgmr.msra.gmra.mrb[0].mxu0 %vm980_vm0, %v2060_v48 }
 0xdb5   : > { %v2110_v50 = vpop.f32.mrb[0].mxu0 }
 0xdb6   : > { %v2111_v51 = vadd.f32 %v2355_v49, %v2110_v50  ;;  %v2512_v52 = vpop.f32.mrb[1].mxu0 }
 0xdb7   : > { %v2113_v53 = vpop.f32.mrb[2].mxu0 }
 0xdb8   : > { %2116 = vst [vmem:[%s3006_s24] sm:$0x3] %v2111_v51  ;;  %v2513_v21 = vpop.f32.mrb[3].mxu0 }
 0xdb9 PF: > { %s34_s5 = sadd.s32 1, %s2587_s5  }
 0xdba   : > { %p31_p6 = scmp.ge.s32.totalorder %s34_s5, 4  }
 0xdbc   :  { %33 = sbr.rel (!%p31_p6) target bundleno = 10 (0xa), region = 191 }

</bundles_post_ra>
